<compile_context>
chip_gen: v7x
topology: tpu7x:2x2x1
jax: 0.10.0
libtpu: 0.0.40
codegen_flags: <defaults>
</compile_context>

<pallas_src>
import math
import functools
import numpy as np
import jax
import jax.numpy as jnp
from jax import lax
from jax.experimental import pallas as pl
from jax.experimental.pallas import tpu as pltpu


# -----------------------------------------------------------------------------
# Host-side (trace-time) relative-position tables.
# -----------------------------------------------------------------------------
def relative_position_table(depth, max_relative_position=127):
    """(2*R+1, depth) sinusoid table — same table the torch helper builds."""
    vocab_size = 2 * max_relative_position + 1
    table = np.zeros((vocab_size, depth), dtype=np.float32)
    position = np.arange(vocab_size, dtype=np.float32)[:, None]
    div_term = np.exp(np.arange(0, depth, 2, dtype=np.float32)
                      * (-math.log(10000.0) / depth))
    table[:, 0::2] = np.sin(position * div_term)
    table[:, 1::2] = np.cos(position * div_term)
    return table


def build_rel_tables(depth, seq_len, max_relative_position, width):
    """Compact extended tables (width >= 2*seq_len, 128-lane aligned).

      te_score[r] = table[clip(r - (S-1), -R, R) + R]   =>  rel[i, j] == te_score[j - i + S - 1]
      te_ctx[r']  = te_score[2S - 1 - r'] (0 outside)   -- reversed copy consumed by the
                    positive-stride unskew (see kernel comments).
    """
    table = relative_position_table(depth, max_relative_position)
    r = np.arange(width)
    idx = (np.clip(r - (seq_len - 1), -max_relative_position, max_relative_position)
           + max_relative_position)
    te_score = table[idx].astype(np.float32)              # (width, depth)
    te_ctx = np.zeros_like(te_score)
    src = 2 * seq_len - 1 - r
    valid = (src >= 0) & (src < width)
    te_ctx[valid] = te_score[src[valid]]
    return te_score, te_ctx


def dense_relative_encoding(table, seq_len, max_relative_position):
    """(S, S, d) dense tensor identical to the torch helper — reference only."""
    i = np.arange(seq_len)
    dist = np.clip(i[None, :] - i[:, None],
                   -max_relative_position, max_relative_position)
    return jnp.asarray(table[dist + max_relative_position])


# -----------------------------------------------------------------------------
# Per-row diagonal shift: row i rolled along lanes by (1 + i), np.roll convention.
# Fast path: one strided XLU rotate.  Fallback: log2(S) static lane shifts gated
# by the bits of the row index (portable, used when the probe fails).
# -----------------------------------------------------------------------------
def _roll_cols(x, s):
    """out[:, j] = x[:, (j - s) % W]  (np.roll convention, static shift)."""
    W = x.shape[-1]
    s = s % W
    if s == 0:
        return x
    return jnp.concatenate([x[:, W - s:], x[:, :W - s]], axis=-1)


def _row_roll_plus_index(x, use_hw_roll):
    S, W = x.shape
    if use_hw_roll:
        # shift of row i is 1 + i: non-negative, < W, increasing -> single XLU op.
        return pltpu.roll(x, 1, 1, stride=1, stride_axis=0)
    out = _roll_cols(x, 1)
    row = lax.broadcasted_iota(jnp.int32, (S, 1), 0)
    b = 0
    while (1 << b) < S:
        out = jnp.where((row & (1 << b)) != 0, _roll_cols(out, 1 << b), out)
        b += 1
    return out


def strided_roll_supported():
    """Probe: does pltpu.roll with (stride=1, stride_axis=0) lower on this TPU and
    match the per-row np.roll semantics the kernel relies on?"""
    try:
        x = np.arange(8 * 128, dtype=np.float32).reshape(8, 128)

        def kern(x_ref, o_ref):
            o_ref[...] = pltpu.roll(x_ref[...], 1, 1, stride=1, stride_axis=0)

        y = pl.pallas_call(
            kern, out_shape=jax.ShapeDtypeStruct((8, 128), jnp.float32))(jnp.asarray(x))
        y = np.asarray(jax.block_until_ready(y))
        want = np.stack([np.roll(x[i], 1 + i) for i in range(8)])
        return bool(np.array_equal(y, want))
    except Exception:
        return False


# -----------------------------------------------------------------------------
# Fused kernel: QKV projection + relative-position attention for one
# (batch element, head group).
# -----------------------------------------------------------------------------
def _nezha_attn_kernel(hs_ref, w_ref, b_ref, tes_ref, tec_ref, rev_ref, mask_ref,
                       ctx_ref, *probs_refs,
                       head_dim, heads_per_block, table_width, out_probs,
                       use_hw_roll):
    S = hs_ref.shape[1]
    d, g, Wp = head_dim, heads_per_block, table_width
    gd = g * d
    f32, bf16 = jnp.float32, jnp.bfloat16

    # Fused Q/K/V projection for this head group (bf16 MXU, f32 accumulation).
    # The 1/sqrt(d) softmax scale is already folded into the Q weights/bias.
    y = jnp.dot(hs_ref[0], w_ref[...], preferred_element_type=f32) + b_ref[...]
    q_all, k_all, v_all = y[:, :gd], y[:, gd:2 * gd], y[:, 2 * gd:]

    te_s = tes_ref[...]                    # (Wp, d) rel-pos table (score side)
    te_c = tec_ref[...]                    # (Wp, d) reversed table (context side)
    rev = rev_ref[...]                     # (S, S) exchange matrix (column reversal), bf16
    mask = mask_ref[0, 0]                  # (1, S) additive mask, broadcast over rows
    zpad = jnp.zeros((S, Wp - S), f32)

    for hh in range(g):
        lo, hi = hh * d, (hh + 1) * d
        q, k, v = q_all[:, lo:hi], k_all[:, lo:hi], v_all[:, lo:hi]

        # Fused score matmul: q @ [te | k]^T -> (S, Wp + S); the split at column
        # Wp is lane-aligned because Wp is a multiple of 128.
        kt = jnp.concatenate([te_s, k], axis=0)
        sfull = jnp.einsum('sd,td->st', q.astype(bf16), kt.astype(bf16),
                           preferred_element_type=f32)
        qt, qk = sfull[:, :Wp], sfull[:, Wp:]
        # skew: rel_k[i, j] = qt[i, j - i + S - 1]  == roll row i by (1 + i),
        # then take the lane-aligned column window [S, 2S).
        rel_k = _row_roll_plus_index(qt, use_hw_roll)[:, S:2 * S]
        scores = qk + rel_k + mask

        # softmax in f32 (VPU/EUP); exact reciprocal only when probs are returned.
        m = jnp.max(scores, axis=-1, keepdims=True)
        e = jnp.exp(scores - m)
        p = e * pl.reciprocal(jnp.sum(e, axis=-1, keepdims=True),
                              approx=not out_probs)
        if out_probs:
            probs_refs[0][0, hh] = p
        # TODO(synk): attention-probs dropout / head_mask are identity in eval mode.

        # unskew with the SAME positive-stride roll: reverse p's columns on the
        # MXU (p @ rev), zero-pad to Wp, roll row i by (1 + i); the host-reversed
        # table te_c then gives  (rolled @ te_c)[i] == sum_j p[i,j]*te_score[j-i+S-1].
        p_rev = jnp.dot(p.astype(bf16), rev, preferred_element_type=f32)
        pe = _row_roll_plus_index(jnp.concatenate([p_rev, zpad], axis=1), use_hw_roll)

        # Fused context matmul: [pe | p] @ [te_c ; v] -> (S, d); store this head's
        # context directly (frees its registers before the next head).
        pv = jnp.concatenate([pe, p], axis=1).astype(bf16)
        vt = jnp.concatenate([te_c, v], axis=0).astype(bf16)
        ctx_ref[0, :, lo:hi] = jnp.dot(pv, vt, preferred_element_type=f32)


# -----------------------------------------------------------------------------
# Wrapper
# -----------------------------------------------------------------------------
def _heads_per_block(num_heads, head_dim):
    """Smallest head group giving 128-lane-dense blocks; else all heads (full H)."""
    for gg in range(1, num_heads):
        if num_heads % gg == 0 and (gg * head_dim) % 128 == 0:
            return gg
    return num_heads


@functools.partial(jax.jit, static_argnames=("num_heads", "max_relative_position",
                                              "output_attentions", "use_hw_roll"))
def nezha_self_attention(hidden_states, params, attention_mask=None, *,
                         num_heads, max_relative_position,
                         output_attentions=False, use_hw_roll=True):
    # TODO(synk): cross-attention (encoder_hidden_states) path not implemented.
    B, S, H = hidden_states.shape
    d = H // num_heads
    g = _heads_per_block(num_heads, d)
    n_hblk = num_heads // g
    Wp = max(128, ((2 * S + 127) // 128) * 128)       # lane-aligned table width >= 2S
    scale = 1.0 / math.sqrt(d)

    # Q/K/V weights arranged per head group as [Q | K | V] column blocks; the
    # softmax scale is folded into the Q columns; bf16 for the MXU.
    wq, bq = params["wq"] * scale, params["bq"] * scale
    w_cols, b_cols = [], []
    for grp in range(n_hblk):
        sl = slice(grp * g * d, (grp + 1) * g * d)
        w_cols += [wq[:, sl], params["wk"][:, sl], params["wv"][:, sl]]
        b_cols += [bq[:, sl], params["bk"][:, sl], params["bv"][:, sl]]
    w_arr = jnp.concatenate(w_cols, axis=1).astype(jnp.bfloat16)       # (H, 3H)
    b_arr = jnp.concatenate(b_cols, axis=1).astype(jnp.float32)        # (1, 3H)

    te_score_np, te_ctx_np = build_rel_tables(d, S, max_relative_position, Wp)
    te_score = jnp.asarray(te_score_np)                                # (Wp, d)
    te_ctx = jnp.asarray(te_ctx_np)                                    # (Wp, d)
    rev = jnp.asarray(np.eye(S, dtype=np.float32)[::-1].copy(),
                      dtype=jnp.bfloat16)                              # (S, S) exchange

    if attention_mask is None:
        attention_mask = jnp.zeros((B, 1, 1, S), dtype=jnp.float32)
    attention_mask = attention_mask.astype(jnp.float32)
    hs = hidden_states.astype(jnp.bfloat16)                            # halve HBM read

    cost = pl.CostEstimate(
        flops=int(2 * B * S * H * 3 * H
                  + B * num_heads * (4 * S * d * (S + Wp) + 2 * S * S * S)),
        transcendentals=int(B * num_heads * S * S),
        bytes_accessed=int(2 * (n_hblk * B * S * H + 3 * H * H + S * S)
                           + 4 * (2 * Wp * d + 3 * H + B * S + B * S * H)
                           + (4 * B * num_heads * S * S if output_attentions else 0)),
    )

    kernel = functools.partial(
        _nezha_attn_kernel, head_dim=d, heads_per_block=g, table_width=Wp,
        out_probs=output_attentions, use_hw_roll=use_hw_roll)

    in_specs = [
        pl.BlockSpec((1, S, H), lambda b, hg: (b, 0, 0)),           # hidden states
        pl.BlockSpec((H, 3 * g * d), lambda b, hg: (0, hg)),        # fused QKV weights
        pl.BlockSpec((1, 3 * g * d), lambda b, hg: (0, hg)),        # fused QKV bias
        pl.BlockSpec((Wp, d), lambda b, hg: (0, 0)),                # rel table (scores)
        pl.BlockSpec((Wp, d), lambda b, hg: (0, 0)),                # reversed rel table
        pl.BlockSpec((S, S), lambda b, hg: (0, 0)),                 # exchange matrix
        pl.BlockSpec((1, 1, 1, S), lambda b, hg: (b, 0, 0, 0)),     # additive mask
    ]
    if output_attentions:
        out_shape = (jax.ShapeDtypeStruct((B, S, H), jnp.float32),
                     jax.ShapeDtypeStruct((B, num_heads, S, S), jnp.float32))
        out_specs = (pl.BlockSpec((1, S, g * d), lambda b, hg: (b, 0, hg)),
                     pl.BlockSpec((1, g, S, S), lambda b, hg: (b, hg, 0, 0)))
    else:
        out_shape = jax.ShapeDtypeStruct((B, S, H), jnp.float32)
        out_specs = pl.BlockSpec((1, S, g * d), lambda b, hg: (b, 0, hg))

    outs = pl.pallas_call(
        kernel,
        out_shape=out_shape,
        grid=(B, n_hblk),
        in_specs=in_specs,
        out_specs=out_specs,
        compiler_params=pltpu.CompilerParams(
            dimension_semantics=("parallel", "parallel")),
        cost_estimate=cost,
    )(hs, w_arr, b_arr, te_score, te_ctx, rev, attention_mask)

    if output_attentions:
        return outs[0], outs[1]
    return (outs,)


# -----------------------------------------------------------------------------
# Pure-JAX reference (mirrors the PyTorch forward) for verification.
# -----------------------------------------------------------------------------
def nezha_reference(hidden_states, params, attention_mask, num_heads,
                    max_relative_position):
    B, S, H = hidden_states.shape
    d = H // num_heads
    table = relative_position_table(d, max_relative_position)
    rel = dense_relative_encoding(table, S, max_relative_position)     # (S, S, d)
    q = hidden_states @ params["wq"] + params["bq"]
    k = hidden_states @ params["wk"] + params["bk"]
    v = hidden_states @ params["wv"] + params["bv"]
    sh = lambda x: x.reshape(B, S, num_heads, d).transpose(0, 2, 1, 3)
    q, k, v = sh(q), sh(k), sh(v)
    scores = jnp.einsum("bhid,bhjd->bhij", q, k)
    scores = scores + jnp.einsum("bhid,ijd->bhij", q, rel)
    scores = scores / math.sqrt(d)
    if attention_mask is not None:
        scores = scores + attention_mask
    probs = jax.nn.softmax(scores, axis=-1)
    ctx = jnp.einsum("bhij,bhjd->bhid", probs, v)
    ctx = ctx + jnp.einsum("bhij,ijd->bhid", probs, rel)
    return ctx.transpose(0, 2, 1, 3).reshape(B, S, H), probs


# -----------------------------------------------------------------------------
if __name__ == "__main__":
    B, S, H, NH = 2, 8, 32, 4
    MAX_REL = 4          # small enough that distance clipping is exercised (|j-i| up to 7)

    key = jax.random.PRNGKey(0)
    k_hs, k_wq, k_wk, k_wv, k_bq, k_bk, k_bv = jax.random.split(key, 7)
    hidden_states = jax.random.normal(k_hs, (B, S, H), dtype=jnp.float32)
    params = {
        "wq": 0.02 * jax.random.normal(k_wq, (H, H), dtype=jnp.float32),
        "wk": 0.02 * jax.random.normal(k_wk, (H, H), dtype=jnp.float32),
        "wv": 0.02 * jax.random.normal(k_wv, (H, H), dtype=jnp.float32),
        "bq": 0.02 * jax.random.normal(k_bq, (1, H), dtype=jnp.float32),
        "bk": 0.02 * jax.random.normal(k_bk, (1, H), dtype=jnp.float32),
        "bv": 0.02 * jax.random.normal(k_bv, (1, H), dtype=jnp.float32),
    }
    # additive mask; mask out the last two key positions of batch element 1
    mask_np = np.zeros((B, 1, 1, S), dtype=np.float32)
    mask_np[1, :, :, S - 2:] = -10000.0
    attention_mask = jnp.asarray(mask_np)

    ref_ctx, ref_probs = nezha_reference(hidden_states, params, attention_mask,
                                         NH, MAX_REL)

    def run_and_check(use_hw_roll):
        ctx, pr = nezha_self_attention(
            hidden_states, params, attention_mask,
            num_heads=NH, max_relative_position=MAX_REL,
            output_attentions=True, use_hw_roll=use_hw_roll)
        jax.block_until_ready((ctx, pr))
        # tolerances cover bf16 MXU operands (f32 accumulation)
        np.testing.assert_allclose(np.asarray(ctx), np.asarray(ref_ctx),
                                   rtol=3e-2, atol=3e-2)
        np.testing.assert_allclose(np.asarray(pr), np.asarray(ref_probs),
                                   rtol=2e-2, atol=2e-2)
        return ctx, pr

    # Feature-detect the strided-roll fast path; fall back to the portable
    # static shift chain if it is unsupported on this TPU generation.
    use_roll = strided_roll_supported()
    try:
        context, probs = run_and_check(use_roll)
    except Exception:
        use_roll = False
        context, probs = run_and_check(False)

    # Fast-path default configuration (no attention-probs output).
    (context_fast,) = nezha_self_attention(
        hidden_states, params, attention_mask,
        num_heads=NH, max_relative_position=MAX_REL,
        output_attentions=False, use_hw_roll=use_roll)
    jax.block_until_ready(context_fast)
    np.testing.assert_allclose(np.asarray(context_fast), np.asarray(ref_ctx),
                               rtol=3e-2, atol=3e-2)

    print("KERNEL_OK")
</pallas_src>

<mosaic_0001>
module attributes {stable_mosaic.version = 11 : i64} {
  func.func @kern(%arg0: memref<8x128xf32, #tpu.memory_space<vmem>>, %arg1: memref<8x128xf32, #tpu.memory_space<vmem>>) attributes {dimension_semantics = [], scalar_prefetch = 0 : i64, scratch_operands = 0 : i64, tpu.core_type = #tpu.core_type<tc>} {
    %c0 = arith.constant 0 : index
    %c0_0 = arith.constant 0 : index
    %0 = vector.load %arg0[%c0, %c0_0] : memref<8x128xf32, #tpu.memory_space<vmem>>, vector<8x128xf32>
    %c1_i32 = arith.constant 1 : i32
    %1 = tpu.dynamic_rotate %0 by %c1_i32 dim 1 {stride = 1 : si32, stride_dimension = 0 : si32} : vector<8x128xf32>, i32 -> vector<8x128xf32>
    %c0_1 = arith.constant 0 : index
    %c0_2 = arith.constant 0 : index
    %2 = vector.load %arg1[%c0_1, %c0_2] : memref<8x128xf32, #tpu.memory_space<vmem>>, vector<8x128xf32>
    tpu.vector_store %arg1[%c0_1, %c0_2], %1 {strides = array<i32>} : memref<8x128xf32, #tpu.memory_space<vmem>>, vector<8x128xf32>,
    return
  }
}

module attributes {stable_mosaic.version = 11 : i64} {
  func.func @_nezha_attn_kernel(%arg0: i32, %arg1: i32, %arg2: memref<1x8x32xbf16, #tpu.memory_space<vmem>>, %arg3: memref<32x96xbf16, #tpu.memory_space<vmem>>, %arg4: memref<1x96xf32, #tpu.memory_space<vmem>>, %arg5: memref<128x8xf32, #tpu.memory_space<vmem>>, %arg6: memref<128x8xf32, #tpu.memory_space<vmem>>, %arg7: memref<8x8xbf16, #tpu.memory_space<vmem>>, %arg8: memref<1x1x1x8xf32, #tpu.memory_space<vmem>>, %arg9: memref<1x8x32xf32, #tpu.memory_space<vmem>>, %arg10: memref<1x4x8x8xf32, #tpu.memory_space<vmem>>) attributes {dimension_semantics = [#tpu.dimension_semantics<parallel>, #tpu.dimension_semantics<parallel>], iteration_bounds = array<i64: 2, 1>, scalar_prefetch = 0 : i64, scratch_operands = 0 : i64, tpu.core_type = #tpu.core_type<tc>, window_params = [{transform_indices = @transform_0, window_bounds = array<i64: 1, 8, 32>}, {transform_indices = @transform_1, window_bounds = array<i64: 32, 96>}, {transform_indices = @transform_2, window_bounds = array<i64: 1, 96>}, {pipeline_mode = #tpu.pipeline_mode<synchronous>, transform_indices = @transform_3, window_bounds = array<i64: 128, 8>}, {pipeline_mode = #tpu.pipeline_mode<synchronous>, transform_indices = @transform_4, window_bounds = array<i64: 128, 8>}, {pipeline_mode = #tpu.pipeline_mode<synchronous>, transform_indices = @transform_5, window_bounds = array<i64: 8, 8>}, {transform_indices = @transform_6, window_bounds = array<i64: 1, 1, 1, 8>}, {transform_indices = @transform_7, window_bounds = array<i64: 1, 8, 32>}, {transform_indices = @transform_8, window_bounds = array<i64: 1, 4, 8, 8>}]} {
    %c0 = arith.constant 0 : index
    %c0_0 = arith.constant 0 : index
    %c0_1 = arith.constant 0 : index
    %0 = vector.load %arg2[%c0, %c0_0, %c0_1] : memref<1x8x32xbf16, #tpu.memory_space<vmem>>, vector<1x8x32xbf16>
    %1 = vector.shape_cast %0 : vector<1x8x32xbf16> to vector<8x32xbf16>
    %c0_2 = arith.constant 0 : index
    %c0_3 = arith.constant 0 : index
    %2 = vector.load %arg3[%c0_2, %c0_3] : memref<32x96xbf16, #tpu.memory_space<vmem>>, vector<32x96xbf16>
    %cst = arith.constant dense<0.000000e+00> : vector<8x96xf32>
    %3 = tpu.matmul %1, %2, %cst {dimension_numbers = #tpu.dot_dimension_numbers<[1], [0], [0], [1], [0, 0, 1, 1], [], []>} : vector<8x32xbf16>, vector<32x96xbf16>, vector<8x96xf32> -> vector<8x96xf32>
    %c0_4 = arith.constant 0 : index
    %c0_5 = arith.constant 0 : index
    %4 = vector.load %arg4[%c0_4, %c0_5] : memref<1x96xf32, #tpu.memory_space<vmem>>, vector<1x96xf32>
    %5 = vector.broadcast %4 : vector<1x96xf32> to vector<8x96xf32>
    %6 = arith.addf %3, %5 : vector<8x96xf32>
    %7 = vector.extract_strided_slice %6 {offsets = [0, 0], sizes = [8, 32], strides = [1, 1]} : vector<8x96xf32> to vector<8x32xf32>
    %8 = vector.extract_strided_slice %6 {offsets = [0, 32], sizes = [8, 32], strides = [1, 1]} : vector<8x96xf32> to vector<8x32xf32>
    %9 = vector.extract_strided_slice %6 {offsets = [0, 64], sizes = [8, 32], strides = [1, 1]} : vector<8x96xf32> to vector<8x32xf32>
    %c0_6 = arith.constant 0 : index
    %c0_7 = arith.constant 0 : index
    %10 = vector.load %arg5[%c0_6, %c0_7] : memref<128x8xf32, #tpu.memory_space<vmem>>, vector<128x8xf32>
    %c0_8 = arith.constant 0 : index
    %c0_9 = arith.constant 0 : index
    %11 = vector.load %arg6[%c0_8, %c0_9] : memref<128x8xf32, #tpu.memory_space<vmem>>, vector<128x8xf32>
    %c0_10 = arith.constant 0 : index
    %c0_11 = arith.constant 0 : index
    %12 = vector.load %arg7[%c0_10, %c0_11] : memref<8x8xbf16, #tpu.memory_space<vmem>>, vector<8x8xbf16>
    %c0_12 = arith.constant 0 : index
    %c0_13 = arith.constant 0 : index
    %c0_14 = arith.constant 0 : index
    %c0_15 = arith.constant 0 : index
    %13 = vector.load %arg8[%c0_12, %c0_13, %c0_14, %c0_15] : memref<1x1x1x8xf32, #tpu.memory_space<vmem>>, vector<1x1x1x8xf32>
    %14 = vector.shape_cast %13 : vector<1x1x1x8xf32> to vector<1x8xf32>
    %cst_16 = arith.constant 0.000000e+00 : f32
    %15 = vector.broadcast %cst_16 : f32 to vector<8x120xf32>
    %16 = vector.extract_strided_slice %7 {offsets = [0, 0], sizes = [8, 8], strides = [1, 1]} : vector<8x32xf32> to vector<8x8xf32>
    %17 = vector.extract_strided_slice %8 {offsets = [0, 0], sizes = [8, 8], strides = [1, 1]} : vector<8x32xf32> to vector<8x8xf32>
    %18 = vector.extract_strided_slice %9 {offsets = [0, 0], sizes = [8, 8], strides = [1, 1]} : vector<8x32xf32> to vector<8x8xf32>
    %19 = tpu.concatenate %10, %17 in 0 : vector<128x8xf32>, vector<8x8xf32> -> vector<136x8xf32>
    %20 = arith.truncf %16 : vector<8x8xf32> to vector<8x8xbf16>
    %21 = arith.truncf %19 : vector<136x8xf32> to vector<136x8xbf16>
    "tpu.trace_start"() <{level = 10 : i32, message = "sd,td->st"}> : () -> ()
    %cst_17 = arith.constant dense<0.000000e+00> : vector<8x136xf32>
    %22 = tpu.matmul %20, %21, %cst_17 {dimension_numbers = #tpu.dot_dimension_numbers<[1], [1], [0], [0], [0, 0, 1, 0], [], []>} : vector<8x8xbf16>, vector<136x8xbf16>, vector<8x136xf32> -> vector<8x136xf32>
    "tpu.trace_stop"() : () -> ()
    %23 = vector.extract_strided_slice %22 {offsets = [0, 0], sizes = [8, 128], strides = [1, 1]} : vector<8x136xf32> to vector<8x128xf32>
    %24 = vector.extract_strided_slice %22 {offsets = [0, 128], sizes = [8, 8], strides = [1, 1]} : vector<8x136xf32> to vector<8x8xf32>
    %25 = vector.extract_strided_slice %23 {offsets = [0, 127], sizes = [8, 1], strides = [1, 1]} : vector<8x128xf32> to vector<8x1xf32>
    %26 = vector.extract_strided_slice %23 {offsets = [0, 0], sizes = [8, 127], strides = [1, 1]} : vector<8x128xf32> to vector<8x127xf32>
    %27 = tpu.concatenate %25, %26 in 1 : vector<8x1xf32>, vector<8x127xf32> -> vector<8x128xf32>
    %28 = tpu.iota {dimensions = array<i32: 0>} : vector<8x1xi32>
    %c1_i32 = arith.constant 1 : i32
    %29 = vector.broadcast %c1_i32 : i32 to vector<8x1xi32>
    %30 = arith.andi %28, %29 : vector<8x1xi32>
    %c0_i32 = arith.constant 0 : i32
    %31 = vector.broadcast %c0_i32 : i32 to vector<8x1xi32>
    %32 = arith.cmpi ne, %30, %31 : vector<8x1xi32>
    %33 = vector.extract_strided_slice %27 {offsets = [0, 127], sizes = [8, 1], strides = [1, 1]} : vector<8x128xf32> to vector<8x1xf32>
    %34 = vector.extract_strided_slice %27 {offsets = [0, 0], sizes = [8, 127], strides = [1, 1]} : vector<8x128xf32> to vector<8x127xf32>
    %35 = tpu.concatenate %33, %34 in 1 : vector<8x1xf32>, vector<8x127xf32> -> vector<8x128xf32>
    %36 = vector.shape_cast %32 : vector<8x1xi1> to vector<8x1xi1>
    %37 = vector.broadcast %36 : vector<8x1xi1> to vector<8x128xi1>
    %38 = arith.select %37, %35, %27 : vector<8x128xi1>, vector<8x128xf32>
    %c2_i32 = arith.constant 2 : i32
    %39 = vector.broadcast %c2_i32 : i32 to vector<8x1xi32>
    %40 = arith.andi %28, %39 : vector<8x1xi32>
    %c0_i32_18 = arith.constant 0 : i32
    %41 = vector.broadcast %c0_i32_18 : i32 to vector<8x1xi32>
    %42 = arith.cmpi ne, %40, %41 : vector<8x1xi32>
    %43 = vector.extract_strided_slice %38 {offsets = [0, 126], sizes = [8, 2], strides = [1, 1]} : vector<8x128xf32> to vector<8x2xf32>
    %44 = vector.extract_strided_slice %38 {offsets = [0, 0], sizes = [8, 126], strides = [1, 1]} : vector<8x128xf32> to vector<8x126xf32>
    %45 = tpu.concatenate %43, %44 in 1 : vector<8x2xf32>, vector<8x126xf32> -> vector<8x128xf32>
    %46 = vector.shape_cast %42 : vector<8x1xi1> to vector<8x1xi1>
    %47 = vector.broadcast %46 : vector<8x1xi1> to vector<8x128xi1>
    %48 = arith.select %47, %45, %38 : vector<8x128xi1>, vector<8x128xf32>
    %c4_i32 = arith.constant 4 : i32
    %49 = vector.broadcast %c4_i32 : i32 to vector<8x1xi32>
    %50 = arith.andi %28, %49 : vector<8x1xi32>
    %c0_i32_19 = arith.constant 0 : i32
    %51 = vector.broadcast %c0_i32_19 : i32 to vector<8x1xi32>
    %52 = arith.cmpi ne, %50, %51 : vector<8x1xi32>
    %53 = vector.extract_strided_slice %48 {offsets = [0, 124], sizes = [8, 4], strides = [1, 1]} : vector<8x128xf32> to vector<8x4xf32>
    %54 = vector.extract_strided_slice %48 {offsets = [0, 0], sizes = [8, 124], strides = [1, 1]} : vector<8x128xf32> to vector<8x124xf32>
    %55 = tpu.concatenate %53, %54 in 1 : vector<8x4xf32>, vector<8x124xf32> -> vector<8x128xf32>
    %56 = vector.shape_cast %52 : vector<8x1xi1> to vector<8x1xi1>
    %57 = vector.broadcast %56 : vector<8x1xi1> to vector<8x128xi1>
    %58 = arith.select %57, %55, %48 : vector<8x128xi1>, vector<8x128xf32>
    %59 = vector.extract_strided_slice %58 {offsets = [0, 8], sizes = [8, 8], strides = [1, 1]} : vector<8x128xf32> to vector<8x8xf32>
    %60 = arith.addf %24, %59 : vector<8x8xf32>
    %61 = vector.broadcast %14 : vector<1x8xf32> to vector<8x8xf32>
    %62 = arith.addf %60, %61 : vector<8x8xf32>
    %cst_20 = arith.constant dense<0xFF800000> : vector<8xf32>
    %63 = vector.multi_reduction <maximumf>, %62, %cst_20 [1] : vector<8x8xf32> to vector<8xf32>
    %64 = vector.shape_cast %63 : vector<8xf32> to vector<8x1xf32>
    %65 = vector.broadcast %64 : vector<8x1xf32> to vector<8x8xf32>
    %66 = arith.subf %62, %65 : vector<8x8xf32>
    %67 = math.exp %66 : vector<8x8xf32>
    %cst_21 = arith.constant dense<0.000000e+00> : vector<8xf32>
    %68 = vector.multi_reduction <add>, %67, %cst_21 [1] : vector<8x8xf32> to vector<8xf32>
    %69 = vector.shape_cast %68 : vector<8xf32> to vector<8x1xf32>
    %70 = tpu.reciprocal %69 : vector<8x1xf32> -> vector<8x1xf32>
    %71 = vector.broadcast %70 : vector<8x1xf32> to vector<8x8xf32>
    %72 = arith.mulf %67, %71 : vector<8x8xf32>
    %c0_22 = arith.constant 0 : index
    %c0_23 = arith.constant 0 : index
    %c0_24 = arith.constant 0 : index
    %c0_25 = arith.constant 0 : index
    %73 = vector.load %arg10[%c0_22, %c0_23, %c0_24, %c0_25] : memref<1x4x8x8xf32, #tpu.memory_space<vmem>>, vector<1x1x8x8xf32>
    %74 = vector.shape_cast %73 : vector<1x1x8x8xf32> to vector<8x8xf32>
    %75 = vector.shape_cast %72 : vector<8x8xf32> to vector<1x1x8x8xf32>
    tpu.vector_store %arg10[%c0_22, %c0_23, %c0_24, %c0_25], %75 {strides = array<i32>} : memref<1x4x8x8xf32, #tpu.memory_space<vmem>>, vector<1x1x8x8xf32>,
    %76 = arith.truncf %72 : vector<8x8xf32> to vector<8x8xbf16>
    %cst_26 = arith.constant dense<0.000000e+00> : vector<8x8xf32>
    %77 = tpu.matmul %76, %12, %cst_26 {dimension_numbers = #tpu.dot_dimension_numbers<[1], [0], [0], [1], [0, 0, 1, 1], [], []>} : vector<8x8xbf16>, vector<8x8xbf16>, vector<8x8xf32> -> vector<8x8xf32>
    %78 = tpu.concatenate %77, %15 in 1 : vector<8x8xf32>, vector<8x120xf32> -> vector<8x128xf32>
    %79 = vector.extract_strided_slice %78 {offsets = [0, 127], sizes = [8, 1], strides = [1, 1]} : vector<8x128xf32> to vector<8x1xf32>
    %80 = vector.extract_strided_slice %78 {offsets = [0, 0], sizes = [8, 127], strides = [1, 1]} : vector<8x128xf32> to vector<8x127xf32>
    %81 = tpu.concatenate %79, %80 in 1 : vector<8x1xf32>, vector<8x127xf32> -> vector<8x128xf32>
    %82 = tpu.iota {dimensions = array<i32: 0>} : vector<8x1xi32>
    %c1_i32_27 = arith.constant 1 : i32
    %83 = vector.broadcast %c1_i32_27 : i32 to vector<8x1xi32>
    %84 = arith.andi %82, %83 : vector<8x1xi32>
    %c0_i32_28 = arith.constant 0 : i32
    %85 = vector.broadcast %c0_i32_28 : i32 to vector<8x1xi32>
    %86 = arith.cmpi ne, %84, %85 : vector<8x1xi32>
    %87 = vector.extract_strided_slice %81 {offsets = [0, 127], sizes = [8, 1], strides = [1, 1]} : vector<8x128xf32> to vector<8x1xf32>
    %88 = vector.extract_strided_slice %81 {offsets = [0, 0], sizes = [8, 127], strides = [1, 1]} : vector<8x128xf32> to vector<8x127xf32>
    %89 = tpu.concatenate %87, %88 in 1 : vector<8x1xf32>, vector<8x127xf32> -> vector<8x128xf32>
    %90 = vector.shape_cast %86 : vector<8x1xi1> to vector<8x1xi1>
    %91 = vector.broadcast %90 : vector<8x1xi1> to vector<8x128xi1>
    %92 = arith.select %91, %89, %81 : vector<8x128xi1>, vector<8x128xf32>
    %c2_i32_29 = arith.constant 2 : i32
    %93 = vector.broadcast %c2_i32_29 : i32 to vector<8x1xi32>
    %94 = arith.andi %82, %93 : vector<8x1xi32>
    %c0_i32_30 = arith.constant 0 : i32
    %95 = vector.broadcast %c0_i32_30 : i32 to vector<8x1xi32>
    %96 = arith.cmpi ne, %94, %95 : vector<8x1xi32>
    %97 = vector.extract_strided_slice %92 {offsets = [0, 126], sizes = [8, 2], strides = [1, 1]} : vector<8x128xf32> to vector<8x2xf32>
    %98 = vector.extract_strided_slice %92 {offsets = [0, 0], sizes = [8, 126], strides = [1, 1]} : vector<8x128xf32> to vector<8x126xf32>
    %99 = tpu.concatenate %97, %98 in 1 : vector<8x2xf32>, vector<8x126xf32> -> vector<8x128xf32>
    %100 = vector.shape_cast %96 : vector<8x1xi1> to vector<8x1xi1>
    %101 = vector.broadcast %100 : vector<8x1xi1> to vector<8x128xi1>
    %102 = arith.select %101, %99, %92 : vector<8x128xi1>, vector<8x128xf32>
    %c4_i32_31 = arith.constant 4 : i32
    %103 = vector.broadcast %c4_i32_31 : i32 to vector<8x1xi32>
    %104 = arith.andi %82, %103 : vector<8x1xi32>
    %c0_i32_32 = arith.constant 0 : i32
    %105 = vector.broadcast %c0_i32_32 : i32 to vector<8x1xi32>
    %106 = arith.cmpi ne, %104, %105 : vector<8x1xi32>
    %107 = vector.extract_strided_slice %102 {offsets = [0, 124], sizes = [8, 4], strides = [1, 1]} : vector<8x128xf32> to vector<8x4xf32>
    %108 = vector.extract_strided_slice %102 {offsets = [0, 0], sizes = [8, 124], strides = [1, 1]} : vector<8x128xf32> to vector<8x124xf32>
    %109 = tpu.concatenate %107, %108 in 1 : vector<8x4xf32>, vector<8x124xf32> -> vector<8x128xf32>
    %110 = vector.shape_cast %106 : vector<8x1xi1> to vector<8x1xi1>
    %111 = vector.broadcast %110 : vector<8x1xi1> to vector<8x128xi1>
    %112 = arith.select %111, %109, %102 : vector<8x128xi1>, vector<8x128xf32>
    %113 = tpu.concatenate %112, %72 in 1 : vector<8x128xf32>, vector<8x8xf32> -> vector<8x136xf32>
    %114 = arith.truncf %113 : vector<8x136xf32> to vector<8x136xbf16>
    %115 = tpu.concatenate %11, %18 in 0 : vector<128x8xf32>, vector<8x8xf32> -> vector<136x8xf32>
    %116 = arith.truncf %115 : vector<136x8xf32> to vector<136x8xbf16>
    %cst_33 = arith.constant dense<0.000000e+00> : vector<8x8xf32>
    %117 = tpu.matmul %114, %116, %cst_33 {dimension_numbers = #tpu.dot_dimension_numbers<[1], [0], [0], [1], [0, 0, 1, 1], [], []>} : vector<8x136xbf16>, vector<136x8xbf16>, vector<8x8xf32> -> vector<8x8xf32>
    %c0_34 = arith.constant 0 : index
    %c0_35 = arith.constant 0 : index
    %c0_36 = arith.constant 0 : index
    %118 = vector.load %arg9[%c0_34, %c0_35, %c0_36] : memref<1x8x32xf32, #tpu.memory_space<vmem>>, vector<1x8x8xf32>
    %119 = vector.shape_cast %118 : vector<1x8x8xf32> to vector<8x8xf32>
    %120 = vector.shape_cast %117 : vector<8x8xf32> to vector<1x8x8xf32>
    tpu.vector_store %arg9[%c0_34, %c0_35, %c0_36], %120 {strides = array<i32>} : memref<1x8x32xf32, #tpu.memory_space<vmem>>, vector<1x8x8xf32>,
    %121 = vector.extract_strided_slice %7 {offsets = [0, 8], sizes = [8, 8], strides = [1, 1]} : vector<8x32xf32> to vector<8x8xf32>
    %122 = vector.extract_strided_slice %8 {offsets = [0, 8], sizes = [8, 8], strides = [1, 1]} : vector<8x32xf32> to vector<8x8xf32>
    %123 = vector.extract_strided_slice %9 {offsets = [0, 8], sizes = [8, 8], strides = [1, 1]} : vector<8x32xf32> to vector<8x8xf32>
    %124 = tpu.concatenate %10, %122 in 0 : vector<128x8xf32>, vector<8x8xf32> -> vector<136x8xf32>
    %125 = arith.truncf %121 : vector<8x8xf32> to vector<8x8xbf16>
    %126 = arith.truncf %124 : vector<136x8xf32> to vector<136x8xbf16>
    "tpu.trace_start"() <{level = 10 : i32, message = "sd,td->st"}> : () -> ()
    %cst_37 = arith.constant dense<0.000000e+00> : vector<8x136xf32>
    %127 = tpu.matmul %125, %126, %cst_37 {dimension_numbers = #tpu.dot_dimension_numbers<[1], [1], [0], [0], [0, 0, 1, 0], [], []>} : vector<8x8xbf16>, vector<136x8xbf16>, vector<8x136xf32> -> vector<8x136xf32>
    "tpu.trace_stop"() : () -> ()
    %128 = vector.extract_strided_slice %127 {offsets = [0, 0], sizes = [8, 128], strides = [1, 1]} : vector<8x136xf32> to vector<8x128xf32>
    %129 = vector.extract_strided_slice %127 {offsets = [0, 128], sizes = [8, 8], strides = [1, 1]} : vector<8x136xf32> to vector<8x8xf32>
    %130 = vector.extract_strided_slice %128 {offsets = [0, 127], sizes = [8, 1], strides = [1, 1]} : vector<8x128xf32> to vector<8x1xf32>
    %131 = vector.extract_strided_slice %128 {offsets = [0, 0], sizes = [8, 127], strides = [1, 1]} : vector<8x128xf32> to vector<8x127xf32>
    %132 = tpu.concatenate %130, %131 in 1 : vector<8x1xf32>, vector<8x127xf32> -> vector<8x128xf32>
    %133 = tpu.iota {dimensions = array<i32: 0>} : vector<8x1xi32>
    %c1_i32_38 = arith.constant 1 : i32
    %134 = vector.broadcast %c1_i32_38 : i32 to vector<8x1xi32>
    %135 = arith.andi %133, %134 : vector<8x1xi32>
    %c0_i32_39 = arith.constant 0 : i32
    %136 = vector.broadcast %c0_i32_39 : i32 to vector<8x1xi32>
    %137 = arith.cmpi ne, %135, %136 : vector<8x1xi32>
    %138 = vector.extract_strided_slice %132 {offsets = [0, 127], sizes = [8, 1], strides = [1, 1]} : vector<8x128xf32> to vector<8x1xf32>
    %139 = vector.extract_strided_slice %132 {offsets = [0, 0], sizes = [8, 127], strides = [1, 1]} : vector<8x128xf32> to vector<8x127xf32>
    %140 = tpu.concatenate %138, %139 in 1 : vector<8x1xf32>, vector<8x127xf32> -> vector<8x128xf32>
    %141 = vector.shape_cast %137 : vector<8x1xi1> to vector<8x1xi1>
    %142 = vector.broadcast %141 : vector<8x1xi1> to vector<8x128xi1>
    %143 = arith.select %142, %140, %132 : vector<8x128xi1>, vector<8x128xf32>
    %c2_i32_40 = arith.constant 2 : i32
    %144 = vector.broadcast %c2_i32_40 : i32 to vector<8x1xi32>
    %145 = arith.andi %133, %144 : vector<8x1xi32>
    %c0_i32_41 = arith.constant 0 : i32
    %146 = vector.broadcast %c0_i32_41 : i32 to vector<8x1xi32>
    %147 = arith.cmpi ne, %145, %146 : vector<8x1xi32>
    %148 = vector.extract_strided_slice %143 {offsets = [0, 126], sizes = [8, 2], strides = [1, 1]} : vector<8x128xf32> to vector<8x2xf32>
    %149 = vector.extract_strided_slice %143 {offsets = [0, 0], sizes = [8, 126], strides = [1, 1]} : vector<8x128xf32> to vector<8x126xf32>
    %150 = tpu.concatenate %148, %149 in 1 : vector<8x2xf32>, vector<8x126xf32> -> vector<8x128xf32>
    %151 = vector.shape_cast %147 : vector<8x1xi1> to vector<8x1xi1>
    %152 = vector.broadcast %151 : vector<8x1xi1> to vector<8x128xi1>
    %153 = arith.select %152, %150, %143 : vector<8x128xi1>, vector<8x128xf32>
    %c4_i32_42 = arith.constant 4 : i32
    %154 = vector.broadcast %c4_i32_42 : i32 to vector<8x1xi32>
    %155 = arith.andi %133, %154 : vector<8x1xi32>
    %c0_i32_43 = arith.constant 0 : i32
    %156 = vector.broadcast %c0_i32_43 : i32 to vector<8x1xi32>
    %157 = arith.cmpi ne, %155, %156 : vector<8x1xi32>
    %158 = vector.extract_strided_slice %153 {offsets = [0, 124], sizes = [8, 4], strides = [1, 1]} : vector<8x128xf32> to vector<8x4xf32>
    %159 = vector.extract_strided_slice %153 {offsets = [0, 0], sizes = [8, 124], strides = [1, 1]} : vector<8x128xf32> to vector<8x124xf32>
    %160 = tpu.concatenate %158, %159 in 1 : vector<8x4xf32>, vector<8x124xf32> -> vector<8x128xf32>
    %161 = vector.shape_cast %157 : vector<8x1xi1> to vector<8x1xi1>
    %162 = vector.broadcast %161 : vector<8x1xi1> to vector<8x128xi1>
    %163 = arith.select %162, %160, %153 : vector<8x128xi1>, vector<8x128xf32>
    %164 = vector.extract_strided_slice %163 {offsets = [0, 8], sizes = [8, 8], strides = [1, 1]} : vector<8x128xf32> to vector<8x8xf32>
    %165 = arith.addf %129, %164 : vector<8x8xf32>
    %166 = vector.broadcast %14 : vector<1x8xf32> to vector<8x8xf32>
    %167 = arith.addf %165, %166 : vector<8x8xf32>
    %cst_44 = arith.constant dense<0xFF800000> : vector<8xf32>
    %168 = vector.multi_reduction <maximumf>, %167, %cst_44 [1] : vector<8x8xf32> to vector<8xf32>
    %169 = vector.shape_cast %168 : vector<8xf32> to vector<8x1xf32>
    %170 = vector.broadcast %169 : vector<8x1xf32> to vector<8x8xf32>
    %171 = arith.subf %167, %170 : vector<8x8xf32>
    %172 = math.exp %171 : vector<8x8xf32>
    %cst_45 = arith.constant dense<0.000000e+00> : vector<8xf32>
    %173 = vector.multi_reduction <add>, %172, %cst_45 [1] : vector<8x8xf32> to vector<8xf32>
    %174 = vector.shape_cast %173 : vector<8xf32> to vector<8x1xf32>
    %175 = tpu.reciprocal %174 : vector<8x1xf32> -> vector<8x1xf32>
    %176 = vector.broadcast %175 : vector<8x1xf32> to vector<8x8xf32>
    %177 = arith.mulf %172, %176 : vector<8x8xf32>
    %c0_46 = arith.constant 0 : index
    %c1 = arith.constant 1 : index
    %c0_47 = arith.constant 0 : index
    %c0_48 = arith.constant 0 : index
    %178 = vector.load %arg10[%c0_46, %c1, %c0_47, %c0_48] : memref<1x4x8x8xf32, #tpu.memory_space<vmem>>, vector<1x1x8x8xf32>
    %179 = vector.shape_cast %178 : vector<1x1x8x8xf32> to vector<8x8xf32>
    %180 = vector.shape_cast %177 : vector<8x8xf32> to vector<1x1x8x8xf32>
    tpu.vector_store %arg10[%c0_46, %c1, %c0_47, %c0_48], %180 {strides = array<i32>} : memref<1x4x8x8xf32, #tpu.memory_space<vmem>>, vector<1x1x8x8xf32>,
    %181 = arith.truncf %177 : vector<8x8xf32> to vector<8x8xbf16>
    %cst_49 = arith.constant dense<0.000000e+00> : vector<8x8xf32>
    %182 = tpu.matmul %181, %12, %cst_49 {dimension_numbers = #tpu.dot_dimension_numbers<[1], [0], [0], [1], [0, 0, 1, 1], [], []>} : vector<8x8xbf16>, vector<8x8xbf16>, vector<8x8xf32> -> vector<8x8xf32>
    %183 = tpu.concatenate %182, %15 in 1 : vector<8x8xf32>, vector<8x120xf32> -> vector<8x128xf32>
    %184 = vector.extract_strided_slice %183 {offsets = [0, 127], sizes = [8, 1], strides = [1, 1]} : vector<8x128xf32> to vector<8x1xf32>
    %185 = vector.extract_strided_slice %183 {offsets = [0, 0], sizes = [8, 127], strides = [1, 1]} : vector<8x128xf32> to vector<8x127xf32>
    %186 = tpu.concatenate %184, %185 in 1 : vector<8x1xf32>, vector<8x127xf32> -> vector<8x128xf32>
    %187 = tpu.iota {dimensions = array<i32: 0>} : vector<8x1xi32>
    %c1_i32_50 = arith.constant 1 : i32
    %188 = vector.broadcast %c1_i32_50 : i32 to vector<8x1xi32>
    %189 = arith.andi %187, %188 : vector<8x1xi32>
    %c0_i32_51 = arith.constant 0 : i32
    %190 = vector.broadcast %c0_i32_51 : i32 to vector<8x1xi32>
    %191 = arith.cmpi ne, %189, %190 : vector<8x1xi32>
    %192 = vector.extract_strided_slice %186 {offsets = [0, 127], sizes = [8, 1], strides = [1, 1]} : vector<8x128xf32> to vector<8x1xf32>
    %193 = vector.extract_strided_slice %186 {offsets = [0, 0], sizes = [8, 127], strides = [1, 1]} : vector<8x128xf32> to vector<8x127xf32>
    %194 = tpu.concatenate %192, %193 in 1 : vector<8x1xf32>, vector<8x127xf32> -> vector<8x128xf32>
    %195 = vector.shape_cast %191 : vector<8x1xi1> to vector<8x1xi1>
    %196 = vector.broadcast %195 : vector<8x1xi1> to vector<8x128xi1>
    %197 = arith.select %196, %194, %186 : vector<8x128xi1>, vector<8x128xf32>
    %c2_i32_52 = arith.constant 2 : i32
    %198 = vector.broadcast %c2_i32_52 : i32 to vector<8x1xi32>
    %199 = arith.andi %187, %198 : vector<8x1xi32>
    %c0_i32_53 = arith.constant 0 : i32
    %200 = vector.broadcast %c0_i32_53 : i32 to vector<8x1xi32>
    %201 = arith.cmpi ne, %199, %200 : vector<8x1xi32>
    %202 = vector.extract_strided_slice %197 {offsets = [0, 126], sizes = [8, 2], strides = [1, 1]} : vector<8x128xf32> to vector<8x2xf32>
    %203 = vector.extract_strided_slice %197 {offsets = [0, 0], sizes = [8, 126], strides = [1, 1]} : vector<8x128xf32> to vector<8x126xf32>
    %204 = tpu.concatenate %202, %203 in 1 : vector<8x2xf32>, vector<8x126xf32> -> vector<8x128xf32>
    %205 = vector.shape_cast %201 : vector<8x1xi1> to vector<8x1xi1>
    %206 = vector.broadcast %205 : vector<8x1xi1> to vector<8x128xi1>
    %207 = arith.select %206, %204, %197 : vector<8x128xi1>, vector<8x128xf32>
    %c4_i32_54 = arith.constant 4 : i32
    %208 = vector.broadcast %c4_i32_54 : i32 to vector<8x1xi32>
    %209 = arith.andi %187, %208 : vector<8x1xi32>
    %c0_i32_55 = arith.constant 0 : i32
    %210 = vector.broadcast %c0_i32_55 : i32 to vector<8x1xi32>
    %211 = arith.cmpi ne, %209, %210 : vector<8x1xi32>
    %212 = vector.extract_strided_slice %207 {offsets = [0, 124], sizes = [8, 4], strides = [1, 1]} : vector<8x128xf32> to vector<8x4xf32>
    %213 = vector.extract_strided_slice %207 {offsets = [0, 0], sizes = [8, 124], strides = [1, 1]} : vector<8x128xf32> to vector<8x124xf32>
    %214 = tpu.concatenate %212, %213 in 1 : vector<8x4xf32>, vector<8x124xf32> -> vector<8x128xf32>
    %215 = vector.shape_cast %211 : vector<8x1xi1> to vector<8x1xi1>
    %216 = vector.broadcast %215 : vector<8x1xi1> to vector<8x128xi1>
    %217 = arith.select %216, %214, %207 : vector<8x128xi1>, vector<8x128xf32>
    %218 = tpu.concatenate %217, %177 in 1 : vector<8x128xf32>, vector<8x8xf32> -> vector<8x136xf32>
    %219 = arith.truncf %218 : vector<8x136xf32> to vector<8x136xbf16>
    %220 = tpu.concatenate %11, %123 in 0 : vector<128x8xf32>, vector<8x8xf32> -> vector<136x8xf32>
    %221 = arith.truncf %220 : vector<136x8xf32> to vector<136x8xbf16>
    %cst_56 = arith.constant dense<0.000000e+00> : vector<8x8xf32>
    %222 = tpu.matmul %219, %221, %cst_56 {dimension_numbers = #tpu.dot_dimension_numbers<[1], [0], [0], [1], [0, 0, 1, 1], [], []>} : vector<8x136xbf16>, vector<136x8xbf16>, vector<8x8xf32> -> vector<8x8xf32>
    %c0_57 = arith.constant 0 : index
    %c0_58 = arith.constant 0 : index
    %c8 = arith.constant 8 : index
    %223 = vector.load %arg9[%c0_57, %c0_58, %c8] : memref<1x8x32xf32, #tpu.memory_space<vmem>>, vector<1x8x8xf32>
    %224 = vector.shape_cast %223 : vector<1x8x8xf32> to vector<8x8xf32>
    %225 = vector.shape_cast %222 : vector<8x8xf32> to vector<1x8x8xf32>
    tpu.vector_store %arg9[%c0_57, %c0_58, %c8], %225 {strides = array<i32>} : memref<1x8x32xf32, #tpu.memory_space<vmem>>, vector<1x8x8xf32>,
    %226 = vector.extract_strided_slice %7 {offsets = [0, 16], sizes = [8, 8], strides = [1, 1]} : vector<8x32xf32> to vector<8x8xf32>
    %227 = vector.extract_strided_slice %8 {offsets = [0, 16], sizes = [8, 8], strides = [1, 1]} : vector<8x32xf32> to vector<8x8xf32>
    %228 = vector.extract_strided_slice %9 {offsets = [0, 16], sizes = [8, 8], strides = [1, 1]} : vector<8x32xf32> to vector<8x8xf32>
    %229 = tpu.concatenate %10, %227 in 0 : vector<128x8xf32>, vector<8x8xf32> -> vector<136x8xf32>
    %230 = arith.truncf %226 : vector<8x8xf32> to vector<8x8xbf16>
    %231 = arith.truncf %229 : vector<136x8xf32> to vector<136x8xbf16>
    "tpu.trace_start"() <{level = 10 : i32, message = "sd,td->st"}> : () -> ()
    %cst_59 = arith.constant dense<0.000000e+00> : vector<8x136xf32>
    %232 = tpu.matmul %230, %231, %cst_59 {dimension_numbers = #tpu.dot_dimension_numbers<[1], [1], [0], [0], [0, 0, 1, 0], [], []>} : vector<8x8xbf16>, vector<136x8xbf16>, vector<8x136xf32> -> vector<8x136xf32>
    "tpu.trace_stop"() : () -> ()
    %233 = vector.extract_strided_slice %232 {offsets = [0, 0], sizes = [8, 128], strides = [1, 1]} : vector<8x136xf32> to vector<8x128xf32>
    %234 = vector.extract_strided_slice %232 {offsets = [0, 128], sizes = [8, 8], strides = [1, 1]} : vector<8x136xf32> to vector<8x8xf32>
    %235 = vector.extract_strided_slice %233 {offsets = [0, 127], sizes = [8, 1], strides = [1, 1]} : vector<8x128xf32> to vector<8x1xf32>
    %236 = vector.extract_strided_slice %233 {offsets = [0, 0], sizes = [8, 127], strides = [1, 1]} : vector<8x128xf32> to vector<8x127xf32>
    %237 = tpu.concatenate %235, %236 in 1 : vector<8x1xf32>, vector<8x127xf32> -> vector<8x128xf32>
    %238 = tpu.iota {dimensions = array<i32: 0>} : vector<8x1xi32>
    %c1_i32_60 = arith.constant 1 : i32
    %239 = vector.broadcast %c1_i32_60 : i32 to vector<8x1xi32>
    %240 = arith.andi %238, %239 : vector<8x1xi32>
    %c0_i32_61 = arith.constant 0 : i32
    %241 = vector.broadcast %c0_i32_61 : i32 to vector<8x1xi32>
    %242 = arith.cmpi ne, %240, %241 : vector<8x1xi32>
    %243 = vector.extract_strided_slice %237 {offsets = [0, 127], sizes = [8, 1], strides = [1, 1]} : vector<8x128xf32> to vector<8x1xf32>
    %244 = vector.extract_strided_slice %237 {offsets = [0, 0], sizes = [8, 127], strides = [1, 1]} : vector<8x128xf32> to vector<8x127xf32>
    %245 = tpu.concatenate %243, %244 in 1 : vector<8x1xf32>, vector<8x127xf32> -> vector<8x128xf32>
    %246 = vector.shape_cast %242 : vector<8x1xi1> to vector<8x1xi1>
    %247 = vector.broadcast %246 : vector<8x1xi1> to vector<8x128xi1>
    %248 = arith.select %247, %245, %237 : vector<8x128xi1>, vector<8x128xf32>
    %c2_i32_62 = arith.constant 2 : i32
    %249 = vector.broadcast %c2_i32_62 : i32 to vector<8x1xi32>
    %250 = arith.andi %238, %249 : vector<8x1xi32>
    %c0_i32_63 = arith.constant 0 : i32
    %251 = vector.broadcast %c0_i32_63 : i32 to vector<8x1xi32>
    %252 = arith.cmpi ne, %250, %251 : vector<8x1xi32>
    %253 = vector.extract_strided_slice %248 {offsets = [0, 126], sizes = [8, 2], strides = [1, 1]} : vector<8x128xf32> to vector<8x2xf32>
    %254 = vector.extract_strided_slice %248 {offsets = [0, 0], sizes = [8, 126], strides = [1, 1]} : vector<8x128xf32> to vector<8x126xf32>
    %255 = tpu.concatenate %253, %254 in 1 : vector<8x2xf32>, vector<8x126xf32> -> vector<8x128xf32>
    %256 = vector.shape_cast %252 : vector<8x1xi1> to vector<8x1xi1>
    %257 = vector.broadcast %256 : vector<8x1xi1> to vector<8x128xi1>
    %258 = arith.select %257, %255, %248 : vector<8x128xi1>, vector<8x128xf32>
    %c4_i32_64 = arith.constant 4 : i32
    %259 = vector.broadcast %c4_i32_64 : i32 to vector<8x1xi32>
    %260 = arith.andi %238, %259 : vector<8x1xi32>
    %c0_i32_65 = arith.constant 0 : i32
    %261 = vector.broadcast %c0_i32_65 : i32 to vector<8x1xi32>
    %262 = arith.cmpi ne, %260, %261 : vector<8x1xi32>
    %263 = vector.extract_strided_slice %258 {offsets = [0, 124], sizes = [8, 4], strides = [1, 1]} : vector<8x128xf32> to vector<8x4xf32>
    %264 = vector.extract_strided_slice %258 {offsets = [0, 0], sizes = [8, 124], strides = [1, 1]} : vector<8x128xf32> to vector<8x124xf32>
    %265 = tpu.concatenate %263, %264 in 1 : vector<8x4xf32>, vector<8x124xf32> -> vector<8x128xf32>
    %266 = vector.shape_cast %262 : vector<8x1xi1> to vector<8x1xi1>
    %267 = vector.broadcast %266 : vector<8x1xi1> to vector<8x128xi1>
    %268 = arith.select %267, %265, %258 : vector<8x128xi1>, vector<8x128xf32>
    %269 = vector.extract_strided_slice %268 {offsets = [0, 8], sizes = [8, 8], strides = [1, 1]} : vector<8x128xf32> to vector<8x8xf32>
    %270 = arith.addf %234, %269 : vector<8x8xf32>
    %271 = vector.broadcast %14 : vector<1x8xf32> to vector<8x8xf32>
    %272 = arith.addf %270, %271 : vector<8x8xf32>
    %cst_66 = arith.constant dense<0xFF800000> : vector<8xf32>
    %273 = vector.multi_reduction <maximumf>, %272, %cst_66 [1] : vector<8x8xf32> to vector<8xf32>
    %274 = vector.shape_cast %273 : vector<8xf32> to vector<8x1xf32>
    %275 = vector.broadcast %274 : vector<8x1xf32> to vector<8x8xf32>
    %276 = arith.subf %272, %275 : vector<8x8xf32>
    %277 = math.exp %276 : vector<8x8xf32>
    %cst_67 = arith.constant dense<0.000000e+00> : vector<8xf32>
    %278 = vector.multi_reduction <add>, %277, %cst_67 [1] : vector<8x8xf32> to vector<8xf32>
    %279 = vector.shape_cast %278 : vector<8xf32> to vector<8x1xf32>
    %280 = tpu.reciprocal %279 : vector<8x1xf32> -> vector<8x1xf32>
    %281 = vector.broadcast %280 : vector<8x1xf32> to vector<8x8xf32>
    %282 = arith.mulf %277, %281 : vector<8x8xf32>
    %c0_68 = arith.constant 0 : index
    %c2 = arith.constant 2 : index
    %c0_69 = arith.constant 0 : index
    %c0_70 = arith.constant 0 : index
    %283 = vector.load %arg10[%c0_68, %c2, %c0_69, %c0_70] : memref<1x4x8x8xf32, #tpu.memory_space<vmem>>, vector<1x1x8x8xf32>
    %284 = vector.shape_cast %283 : vector<1x1x8x8xf32> to vector<8x8xf32>
    %285 = vector.shape_cast %282 : vector<8x8xf32> to vector<1x1x8x8xf32>
    tpu.vector_store %arg10[%c0_68, %c2, %c0_69, %c0_70], %285 {strides = array<i32>} : memref<1x4x8x8xf32, #tpu.memory_space<vmem>>, vector<1x1x8x8xf32>,
    %286 = arith.truncf %282 : vector<8x8xf32> to vector<8x8xbf16>
    %cst_71 = arith.constant dense<0.000000e+00> : vector<8x8xf32>
    %287 = tpu.matmul %286, %12, %cst_71 {dimension_numbers = #tpu.dot_dimension_numbers<[1], [0], [0], [1], [0, 0, 1, 1], [], []>} : vector<8x8xbf16>, vector<8x8xbf16>, vector<8x8xf32> -> vector<8x8xf32>
    %288 = tpu.concatenate %287, %15 in 1 : vector<8x8xf32>, vector<8x120xf32> -> vector<8x128xf32>
    %289 = vector.extract_strided_slice %288 {offsets = [0, 127], sizes = [8, 1], strides = [1, 1]} : vector<8x128xf32> to vector<8x1xf32>
    %290 = vector.extract_strided_slice %288 {offsets = [0, 0], sizes = [8, 127], strides = [1, 1]} : vector<8x128xf32> to vector<8x127xf32>
    %291 = tpu.concatenate %289, %290 in 1 : vector<8x1xf32>, vector<8x127xf32> -> vector<8x128xf32>
    %292 = tpu.iota {dimensions = array<i32: 0>} : vector<8x1xi32>
    %c1_i32_72 = arith.constant 1 : i32
    %293 = vector.broadcast %c1_i32_72 : i32 to vector<8x1xi32>
    %294 = arith.andi %292, %293 : vector<8x1xi32>
    %c0_i32_73 = arith.constant 0 : i32
    %295 = vector.broadcast %c0_i32_73 : i32 to vector<8x1xi32>
    %296 = arith.cmpi ne, %294, %295 : vector<8x1xi32>
    %297 = vector.extract_strided_slice %291 {offsets = [0, 127], sizes = [8, 1], strides = [1, 1]} : vector<8x128xf32> to vector<8x1xf32>
    %298 = vector.extract_strided_slice %291 {offsets = [0, 0], sizes = [8, 127], strides = [1, 1]} : vector<8x128xf32> to vector<8x127xf32>
    %299 = tpu.concatenate %297, %298 in 1 : vector<8x1xf32>, vector<8x127xf32> -> vector<8x128xf32>
    %300 = vector.shape_cast %296 : vector<8x1xi1> to vector<8x1xi1>
    %301 = vector.broadcast %300 : vector<8x1xi1> to vector<8x128xi1>
    %302 = arith.select %301, %299, %291 : vector<8x128xi1>, vector<8x128xf32>
    %c2_i32_74 = arith.constant 2 : i32
    %303 = vector.broadcast %c2_i32_74 : i32 to vector<8x1xi32>
    %304 = arith.andi %292, %303 : vector<8x1xi32>
    %c0_i32_75 = arith.constant 0 : i32
    %305 = vector.broadcast %c0_i32_75 : i32 to vector<8x1xi32>
    %306 = arith.cmpi ne, %304, %305 : vector<8x1xi32>
    %307 = vector.extract_strided_slice %302 {offsets = [0, 126], sizes = [8, 2], strides = [1, 1]} : vector<8x128xf32> to vector<8x2xf32>
    %308 = vector.extract_strided_slice %302 {offsets = [0, 0], sizes = [8, 126], strides = [1, 1]} : vector<8x128xf32> to vector<8x126xf32>
    %309 = tpu.concatenate %307, %308 in 1 : vector<8x2xf32>, vector<8x126xf32> -> vector<8x128xf32>
    %310 = vector.shape_cast %306 : vector<8x1xi1> to vector<8x1xi1>
    %311 = vector.broadcast %310 : vector<8x1xi1> to vector<8x128xi1>
    %312 = arith.select %311, %309, %302 : vector<8x128xi1>, vector<8x128xf32>
    %c4_i32_76 = arith.constant 4 : i32
    %313 = vector.broadcast %c4_i32_76 : i32 to vector<8x1xi32>
    %314 = arith.andi %292, %313 : vector<8x1xi32>
    %c0_i32_77 = arith.constant 0 : i32
    %315 = vector.broadcast %c0_i32_77 : i32 to vector<8x1xi32>
    %316 = arith.cmpi ne, %314, %315 : vector<8x1xi32>
    %317 = vector.extract_strided_slice %312 {offsets = [0, 124], sizes = [8, 4], strides = [1, 1]} : vector<8x128xf32> to vector<8x4xf32>
    %318 = vector.extract_strided_slice %312 {offsets = [0, 0], sizes = [8, 124], strides = [1, 1]} : vector<8x128xf32> to vector<8x124xf32>
    %319 = tpu.concatenate %317, %318 in 1 : vector<8x4xf32>, vector<8x124xf32> -> vector<8x128xf32>
    %320 = vector.shape_cast %316 : vector<8x1xi1> to vector<8x1xi1>
    %321 = vector.broadcast %320 : vector<8x1xi1> to vector<8x128xi1>
    %322 = arith.select %321, %319, %312 : vector<8x128xi1>, vector<8x128xf32>
    %323 = tpu.concatenate %322, %282 in 1 : vector<8x128xf32>, vector<8x8xf32> -> vector<8x136xf32>
    %324 = arith.truncf %323 : vector<8x136xf32> to vector<8x136xbf16>
    %325 = tpu.concatenate %11, %228 in 0 : vector<128x8xf32>, vector<8x8xf32> -> vector<136x8xf32>
    %326 = arith.truncf %325 : vector<136x8xf32> to vector<136x8xbf16>
    %cst_78 = arith.constant dense<0.000000e+00> : vector<8x8xf32>
    %327 = tpu.matmul %324, %326, %cst_78 {dimension_numbers = #tpu.dot_dimension_numbers<[1], [0], [0], [1], [0, 0, 1, 1], [], []>} : vector<8x136xbf16>, vector<136x8xbf16>, vector<8x8xf32> -> vector<8x8xf32>
    %c0_79 = arith.constant 0 : index
    %c0_80 = arith.constant 0 : index
    %c16 = arith.constant 16 : index
    %328 = vector.load %arg9[%c0_79, %c0_80, %c16] : memref<1x8x32xf32, #tpu.memory_space<vmem>>, vector<1x8x8xf32>
    %329 = vector.shape_cast %328 : vector<1x8x8xf32> to vector<8x8xf32>
    %330 = vector.shape_cast %327 : vector<8x8xf32> to vector<1x8x8xf32>
    tpu.vector_store %arg9[%c0_79, %c0_80, %c16], %330 {strides = array<i32>} : memref<1x8x32xf32, #tpu.memory_space<vmem>>, vector<1x8x8xf32>,
    %331 = vector.extract_strided_slice %7 {offsets = [0, 24], sizes = [8, 8], strides = [1, 1]} : vector<8x32xf32> to vector<8x8xf32>
    %332 = vector.extract_strided_slice %8 {offsets = [0, 24], sizes = [8, 8], strides = [1, 1]} : vector<8x32xf32> to vector<8x8xf32>
    %333 = vector.extract_strided_slice %9 {offsets = [0, 24], sizes = [8, 8], strides = [1, 1]} : vector<8x32xf32> to vector<8x8xf32>
    %334 = tpu.concatenate %10, %332 in 0 : vector<128x8xf32>, vector<8x8xf32> -> vector<136x8xf32>
    %335 = arith.truncf %331 : vector<8x8xf32> to vector<8x8xbf16>
    %336 = arith.truncf %334 : vector<136x8xf32> to vector<136x8xbf16>
    "tpu.trace_start"() <{level = 10 : i32, message = "sd,td->st"}> : () -> ()
    %cst_81 = arith.constant dense<0.000000e+00> : vector<8x136xf32>
    %337 = tpu.matmul %335, %336, %cst_81 {dimension_numbers = #tpu.dot_dimension_numbers<[1], [1], [0], [0], [0, 0, 1, 0], [], []>} : vector<8x8xbf16>, vector<136x8xbf16>, vector<8x136xf32> -> vector<8x136xf32>
    "tpu.trace_stop"() : () -> ()
    %338 = vector.extract_strided_slice %337 {offsets = [0, 0], sizes = [8, 128], strides = [1, 1]} : vector<8x136xf32> to vector<8x128xf32>
    %339 = vector.extract_strided_slice %337 {offsets = [0, 128], sizes = [8, 8], strides = [1, 1]} : vector<8x136xf32> to vector<8x8xf32>
    %340 = vector.extract_strided_slice %338 {offsets = [0, 127], sizes = [8, 1], strides = [1, 1]} : vector<8x128xf32> to vector<8x1xf32>
    %341 = vector.extract_strided_slice %338 {offsets = [0, 0], sizes = [8, 127], strides = [1, 1]} : vector<8x128xf32> to vector<8x127xf32>
    %342 = tpu.concatenate %340, %341 in 1 : vector<8x1xf32>, vector<8x127xf32> -> vector<8x128xf32>
    %343 = tpu.iota {dimensions = array<i32: 0>} : vector<8x1xi32>
    %c1_i32_82 = arith.constant 1 : i32
    %344 = vector.broadcast %c1_i32_82 : i32 to vector<8x1xi32>
    %345 = arith.andi %343, %344 : vector<8x1xi32>
    %c0_i32_83 = arith.constant 0 : i32
    %346 = vector.broadcast %c0_i32_83 : i32 to vector<8x1xi32>
    %347 = arith.cmpi ne, %345, %346 : vector<8x1xi32>
    %348 = vector.extract_strided_slice %342 {offsets = [0, 127], sizes = [8, 1], strides = [1, 1]} : vector<8x128xf32> to vector<8x1xf32>
    %349 = vector.extract_strided_slice %342 {offsets = [0, 0], sizes = [8, 127], strides = [1, 1]} : vector<8x128xf32> to vector<8x127xf32>
    %350 = tpu.concatenate %348, %349 in 1 : vector<8x1xf32>, vector<8x127xf32> -> vector<8x128xf32>
    %351 = vector.shape_cast %347 : vector<8x1xi1> to vector<8x1xi1>
    %352 = vector.broadcast %351 : vector<8x1xi1> to vector<8x128xi1>
    %353 = arith.select %352, %350, %342 : vector<8x128xi1>, vector<8x128xf32>
    %c2_i32_84 = arith.constant 2 : i32
    %354 = vector.broadcast %c2_i32_84 : i32 to vector<8x1xi32>
    %355 = arith.andi %343, %354 : vector<8x1xi32>
    %c0_i32_85 = arith.constant 0 : i32
    %356 = vector.broadcast %c0_i32_85 : i32 to vector<8x1xi32>
    %357 = arith.cmpi ne, %355, %356 : vector<8x1xi32>
    %358 = vector.extract_strided_slice %353 {offsets = [0, 126], sizes = [8, 2], strides = [1, 1]} : vector<8x128xf32> to vector<8x2xf32>
    %359 = vector.extract_strided_slice %353 {offsets = [0, 0], sizes = [8, 126], strides = [1, 1]} : vector<8x128xf32> to vector<8x126xf32>
    %360 = tpu.concatenate %358, %359 in 1 : vector<8x2xf32>, vector<8x126xf32> -> vector<8x128xf32>
    %361 = vector.shape_cast %357 : vector<8x1xi1> to vector<8x1xi1>
    %362 = vector.broadcast %361 : vector<8x1xi1> to vector<8x128xi1>
    %363 = arith.select %362, %360, %353 : vector<8x128xi1>, vector<8x128xf32>
    %c4_i32_86 = arith.constant 4 : i32
    %364 = vector.broadcast %c4_i32_86 : i32 to vector<8x1xi32>
    %365 = arith.andi %343, %364 : vector<8x1xi32>
    %c0_i32_87 = arith.constant 0 : i32
    %366 = vector.broadcast %c0_i32_87 : i32 to vector<8x1xi32>
    %367 = arith.cmpi ne, %365, %366 : vector<8x1xi32>
    %368 = vector.extract_strided_slice %363 {offsets = [0, 124], sizes = [8, 4], strides = [1, 1]} : vector<8x128xf32> to vector<8x4xf32>
    %369 = vector.extract_strided_slice %363 {offsets = [0, 0], sizes = [8, 124], strides = [1, 1]} : vector<8x128xf32> to vector<8x124xf32>
    %370 = tpu.concatenate %368, %369 in 1 : vector<8x4xf32>, vector<8x124xf32> -> vector<8x128xf32>
    %371 = vector.shape_cast %367 : vector<8x1xi1> to vector<8x1xi1>
    %372 = vector.broadcast %371 : vector<8x1xi1> to vector<8x128xi1>
    %373 = arith.select %372, %370, %363 : vector<8x128xi1>, vector<8x128xf32>
    %374 = vector.extract_strided_slice %373 {offsets = [0, 8], sizes = [8, 8], strides = [1, 1]} : vector<8x128xf32> to vector<8x8xf32>
    %375 = arith.addf %339, %374 : vector<8x8xf32>
    %376 = vector.broadcast %14 : vector<1x8xf32> to vector<8x8xf32>
    %377 = arith.addf %375, %376 : vector<8x8xf32>
    %cst_88 = arith.constant dense<0xFF800000> : vector<8xf32>
    %378 = vector.multi_reduction <maximumf>, %377, %cst_88 [1] : vector<8x8xf32> to vector<8xf32>
    %379 = vector.shape_cast %378 : vector<8xf32> to vector<8x1xf32>
    %380 = vector.broadcast %379 : vector<8x1xf32> to vector<8x8xf32>
    %381 = arith.subf %377, %380 : vector<8x8xf32>
    %382 = math.exp %381 : vector<8x8xf32>
    %cst_89 = arith.constant dense<0.000000e+00> : vector<8xf32>
    %383 = vector.multi_reduction <add>, %382, %cst_89 [1] : vector<8x8xf32> to vector<8xf32>
    %384 = vector.shape_cast %383 : vector<8xf32> to vector<8x1xf32>
    %385 = tpu.reciprocal %384 : vector<8x1xf32> -> vector<8x1xf32>
    %386 = vector.broadcast %385 : vector<8x1xf32> to vector<8x8xf32>
    %387 = arith.mulf %382, %386 : vector<8x8xf32>
    %c0_90 = arith.constant 0 : index
    %c3 = arith.constant 3 : index
    %c0_91 = arith.constant 0 : index
    %c0_92 = arith.constant 0 : index
    %388 = vector.load %arg10[%c0_90, %c3, %c0_91, %c0_92] : memref<1x4x8x8xf32, #tpu.memory_space<vmem>>, vector<1x1x8x8xf32>
    %389 = vector.shape_cast %388 : vector<1x1x8x8xf32> to vector<8x8xf32>
    %390 = vector.shape_cast %387 : vector<8x8xf32> to vector<1x1x8x8xf32>
    tpu.vector_store %arg10[%c0_90, %c3, %c0_91, %c0_92], %390 {strides = array<i32>} : memref<1x4x8x8xf32, #tpu.memory_space<vmem>>, vector<1x1x8x8xf32>,
    %391 = arith.truncf %387 : vector<8x8xf32> to vector<8x8xbf16>
    %cst_93 = arith.constant dense<0.000000e+00> : vector<8x8xf32>
    %392 = tpu.matmul %391, %12, %cst_93 {dimension_numbers = #tpu.dot_dimension_numbers<[1], [0], [0], [1], [0, 0, 1, 1], [], []>} : vector<8x8xbf16>, vector<8x8xbf16>, vector<8x8xf32> -> vector<8x8xf32>
    %393 = tpu.concatenate %392, %15 in 1 : vector<8x8xf32>, vector<8x120xf32> -> vector<8x128xf32>
    %394 = vector.extract_strided_slice %393 {offsets = [0, 127], sizes = [8, 1], strides = [1, 1]} : vector<8x128xf32> to vector<8x1xf32>
    %395 = vector.extract_strided_slice %393 {offsets = [0, 0], sizes = [8, 127], strides = [1, 1]} : vector<8x128xf32> to vector<8x127xf32>
    %396 = tpu.concatenate %394, %395 in 1 : vector<8x1xf32>, vector<8x127xf32> -> vector<8x128xf32>
    %397 = tpu.iota {dimensions = array<i32: 0>} : vector<8x1xi32>
    %c1_i32_94 = arith.constant 1 : i32
    %398 = vector.broadcast %c1_i32_94 : i32 to vector<8x1xi32>
    %399 = arith.andi %397, %398 : vector<8x1xi32>
    %c0_i32_95 = arith.constant 0 : i32
    %400 = vector.broadcast %c0_i32_95 : i32 to vector<8x1xi32>
    %401 = arith.cmpi ne, %399, %400 : vector<8x1xi32>
    %402 = vector.extract_strided_slice %396 {offsets = [0, 127], sizes = [8, 1], strides = [1, 1]} : vector<8x128xf32> to vector<8x1xf32>
    %403 = vector.extract_strided_slice %396 {offsets = [0, 0], sizes = [8, 127], strides = [1, 1]} : vector<8x128xf32> to vector<8x127xf32>
    %404 = tpu.concatenate %402, %403 in 1 : vector<8x1xf32>, vector<8x127xf32> -> vector<8x128xf32>
    %405 = vector.shape_cast %401 : vector<8x1xi1> to vector<8x1xi1>
    %406 = vector.broadcast %405 : vector<8x1xi1> to vector<8x128xi1>
    %407 = arith.select %406, %404, %396 : vector<8x128xi1>, vector<8x128xf32>
    %c2_i32_96 = arith.constant 2 : i32
    %408 = vector.broadcast %c2_i32_96 : i32 to vector<8x1xi32>
    %409 = arith.andi %397, %408 : vector<8x1xi32>
    %c0_i32_97 = arith.constant 0 : i32
    %410 = vector.broadcast %c0_i32_97 : i32 to vector<8x1xi32>
    %411 = arith.cmpi ne, %409, %410 : vector<8x1xi32>
    %412 = vector.extract_strided_slice %407 {offsets = [0, 126], sizes = [8, 2], strides = [1, 1]} : vector<8x128xf32> to vector<8x2xf32>
    %413 = vector.extract_strided_slice %407 {offsets = [0, 0], sizes = [8, 126], strides = [1, 1]} : vector<8x128xf32> to vector<8x126xf32>
    %414 = tpu.concatenate %412, %413 in 1 : vector<8x2xf32>, vector<8x126xf32> -> vector<8x128xf32>
    %415 = vector.shape_cast %411 : vector<8x1xi1> to vector<8x1xi1>
    %416 = vector.broadcast %415 : vector<8x1xi1> to vector<8x128xi1>
    %417 = arith.select %416, %414, %407 : vector<8x128xi1>, vector<8x128xf32>
    %c4_i32_98 = arith.constant 4 : i32
    %418 = vector.broadcast %c4_i32_98 : i32 to vector<8x1xi32>
    %419 = arith.andi %397, %418 : vector<8x1xi32>
    %c0_i32_99 = arith.constant 0 : i32
    %420 = vector.broadcast %c0_i32_99 : i32 to vector<8x1xi32>
    %421 = arith.cmpi ne, %419, %420 : vector<8x1xi32>
    %422 = vector.extract_strided_slice %417 {offsets = [0, 124], sizes = [8, 4], strides = [1, 1]} : vector<8x128xf32> to vector<8x4xf32>
    %423 = vector.extract_strided_slice %417 {offsets = [0, 0], sizes = [8, 124], strides = [1, 1]} : vector<8x128xf32> to vector<8x124xf32>
    %424 = tpu.concatenate %422, %423 in 1 : vector<8x4xf32>, vector<8x124xf32> -> vector<8x128xf32>
    %425 = vector.shape_cast %421 : vector<8x1xi1> to vector<8x1xi1>
    %426 = vector.broadcast %425 : vector<8x1xi1> to vector<8x128xi1>
    %427 = arith.select %426, %424, %417 : vector<8x128xi1>, vector<8x128xf32>
    %428 = tpu.concatenate %427, %387 in 1 : vector<8x128xf32>, vector<8x8xf32> -> vector<8x136xf32>
    %429 = arith.truncf %428 : vector<8x136xf32> to vector<8x136xbf16>
    %430 = tpu.concatenate %11, %333 in 0 : vector<128x8xf32>, vector<8x8xf32> -> vector<136x8xf32>
    %431 = arith.truncf %430 : vector<136x8xf32> to vector<136x8xbf16>
    %cst_100 = arith.constant dense<0.000000e+00> : vector<8x8xf32>
    %432 = tpu.matmul %429, %431, %cst_100 {dimension_numbers = #tpu.dot_dimension_numbers<[1], [0], [0], [1], [0, 0, 1, 1], [], []>} : vector<8x136xbf16>, vector<136x8xbf16>, vector<8x8xf32> -> vector<8x8xf32>
    %c0_101 = arith.constant 0 : index
    %c0_102 = arith.constant 0 : index
    %c24 = arith.constant 24 : index
    %433 = vector.load %arg9[%c0_101, %c0_102, %c24] : memref<1x8x32xf32, #tpu.memory_space<vmem>>, vector<1x8x8xf32>
    %434 = vector.shape_cast %433 : vector<1x8x8xf32> to vector<8x8xf32>
    %435 = vector.shape_cast %432 : vector<8x8xf32> to vector<1x8x8xf32>
    tpu.vector_store %arg9[%c0_101, %c0_102, %c24], %435 {strides = array<i32>} : memref<1x8x32xf32, #tpu.memory_space<vmem>>, vector<1x8x8xf32>,
    return
  }
  func.func @transform_0(%arg0: i32, %arg1: i32) -> (i32, i32, i32) {
    %c0_i32 = arith.constant 0 : i32
    %c0_i32_0 = arith.constant 0 : i32
    %c0_i32_1 = arith.constant 0 : i32
    return %arg0, %c0_i32, %c0_i32_0 : i32, i32, i32
  }
  func.func @transform_1(%arg0: i32, %arg1: i32) -> (i32, i32) {
    %c0_i32 = arith.constant 0 : i32
    %c0_i32_0 = arith.constant 0 : i32
    return %c0_i32, %arg1 : i32, i32
  }
  func.func @transform_2(%arg0: i32, %arg1: i32) -> (i32, i32) {
    %c0_i32 = arith.constant 0 : i32
    %c0_i32_0 = arith.constant 0 : i32
    return %c0_i32, %arg1 : i32, i32
  }
  func.func @transform_3(%arg0: i32, %arg1: i32) -> (i32, i32) {
    %c0_i32 = arith.constant 0 : i32
    %c0_i32_0 = arith.constant 0 : i32
    %c0_i32_1 = arith.constant 0 : i32
    return %c0_i32, %c0_i32_0 : i32, i32
  }
  func.func @transform_4(%arg0: i32, %arg1: i32) -> (i32, i32) {
    %c0_i32 = arith.constant 0 : i32
    %c0_i32_0 = arith.constant 0 : i32
    %c0_i32_1 = arith.constant 0 : i32
    return %c0_i32, %c0_i32_0 : i32, i32
  }
  func.func @transform_5(%arg0: i32, %arg1: i32) -> (i32, i32) {
    %c0_i32 = arith.constant 0 : i32
    %c0_i32_0 = arith.constant 0 : i32
    %c0_i32_1 = arith.constant 0 : i32
    return %c0_i32, %c0_i32_0 : i32, i32
  }
  func.func @transform_6(%arg0: i32, %arg1: i32) -> (i32, i32, i32, i32) {
    %c0_i32 = arith.constant 0 : i32
    %c0_i32_0 = arith.constant 0 : i32
    %c0_i32_1 = arith.constant 0 : i32
    %c0_i32_2 = arith.constant 0 : i32
    return %arg0, %c0_i32, %c0_i32_0, %c0_i32_1 : i32, i32, i32, i32
  }
  func.func @transform_7(%arg0: i32, %arg1: i32) -> (i32, i32, i32) {
    %c0_i32 = arith.constant 0 : i32
    %c0_i32_0 = arith.constant 0 : i32
    return %arg0, %c0_i32, %arg1 : i32, i32, i32
  }
  func.func @transform_8(%arg0: i32, %arg1: i32) -> (i32, i32, i32, i32) {
    %c0_i32 = arith.constant 0 : i32
    %c0_i32_0 = arith.constant 0 : i32
    %c0_i32_1 = arith.constant 0 : i32
    return %arg0, %arg1, %c0_i32, %c0_i32_0 : i32, i32, i32, i32
  }
}

</mosaic_0001>

<bundles_post_ra>
// kernel: tpu_custom_call.1
= control target key start
LH: loop header
LB: loop body
LE: loop exit
PB: predicated region body
PF: predicated region fallthrough
CT: control target
= control target key end

     0   :  { %6 = vsyncpa [#allocation3], 0  ;;  %s130_s0 = inlined_call_operand.hbm [shape: f32[8,128], index: 0, kind: input, shape index: {}]   ;;  %s131_s1 = inlined_call_operand.hbm [shape: f32[8,128], index: 1, kind: output, shape index: {}]  }
   0x1   :  { %7 = vsyncpa [#allocation4], 0  ;;  %s93_s6 = smov [#allocation2]   ;;  %s45_s10 = scalar_lea.hbm %s130_s0, 128 }
   0x2   :  { %s14_s7 = sshll.u32 %s93_s6, 4  ;;  %p46_p0 = scmp.ne.s32.totalorder %s130_s0, %s45_s10  ;;  %s15_s7 = int_to_ptr.vmem [resolvable:$true] %s14_s7 }
   0x3   :  { %p49_p1 = scmp.lt.u32.totalorder %s45_s10, %s130_s0 }
   0x5   :  { %p51_p2 = pnand %p49_p1, %p46_p0 }
   0x7   :  { %54 = shalt.err (!%p51_p2)
}
   0x8   :  { %s55_s15 = scalar_lea.vmem %s15_s7, 128  ;;  %p60_p4 = scmp.lt.s32.totalorder %s15_s7, %s15_s7 }
   0x9   :  { %p56_p3 = scmp.ne.s32.totalorder %s15_s7, %s55_s15  ;;  %p61_p5 = scmp.lt.s32.totalorder %s55_s15, %s55_s15 }
   0xb   :  { %p62_p6 = por %p61_p5, %p60_p4 }
   0xd   :  { %p63_p7 = pnand %p62_p6, %p56_p3 }
   0xf   :  { %66 = shalt.err (!%p63_p7)
}
  0x10   :  { %17 = dma.hbm_to_vmem [thread:$0]  %s130_s0, 128, %s15_s7, [#allocation3]  }
  0x11   :  { %89 = dma.done.wait [#allocation3], 128  }
  0x12   :  { %90 = vsyncadd [#allocation3], 4294967168  ;;  %v21_v0 = vld [vmem:[#allocation2] sm:$0xff]  ;;  %s94_s18 = smov 257   ;;  %s95_s19 = smov [#allocation5]  }
  0x13   :  { %24 = vrot.lane.b32.xlu0 %v21_v0, %s94_s18  ;;  %s33_s20 = sshll.u32 %s95_s19, 4  ;;  %s34_s20 = int_to_ptr.vmem [resolvable:$true] %s33_s20 }
  0x14   :  { %s67_s21 = scalar_lea.vmem %s34_s20, 128  ;;  %p72_p9 = scmp.lt.s32.totalorder %s34_s20, %s34_s20 }
  0x15   :  { %p68_p8 = scmp.ne.s32.totalorder %s34_s20, %s67_s21  ;;  %p73_p10 = scmp.lt.s32.totalorder %s67_s21, %s67_s21 }
  0x17   :  { %p74_p11 = por %p73_p10, %p72_p9 }
  0x19   :  { %p75_p12 = pnand %p74_p11, %p68_p8 }
  0x85   :  { %v25_v1 = vpop.permute.xlu0 %24 }
  0x86   :  { %26 = vst [vmem:[#allocation5] sm:$0xff] %v25_v1 }
  0x87   :  { %78 = shalt.err (!%p75_p12)
}
  0x88   :  { %s79_s0 = scalar_lea.hbm %s131_s1, 128 }
  0x89   :  { %p80_p13 = scmp.ne.s32.totalorder %s131_s1, %s79_s0  ;;  %p83_p0 = scmp.lt.u32.totalorder %s79_s0, %s131_s1 }
  0x8b   :  { %p85_p1 = pnand %p83_p0, %p80_p13 }
  0x8d   :  { %88 = shalt.err (!%p85_p1)
}
  0x8e   :  { %36 = dma.vmem_to_hbm [thread:$0]  %s34_s20, 128, %s131_s1, [#allocation4]  }
  0x8f   :  { %91 = dma.done.wait [#allocation4], 128  }
  0x90   :  { %92 = vsyncadd [#allocation4], 4294967168 }
  0x91   :  { %40 = vsyncpa [#allocation3], 1 }
  0x92   :  { %41 = vsyncpa [#allocation4], 1 }

// kernel: nezha_self_attention.1
= control target key start
LH: loop header
LB: loop body
LE: loop exit
PB: predicated region body
PF: predicated region fallthrough
CT: control target
= control target key end

     0   :  { %s2557_s0 = inlined_call_operand.vmem [shape: bf16[2,8,32], index: 0, kind: input, shape index: {}]   ;;  %s2558_s1 = inlined_call_operand.vmem [shape: bf16[32,96], index: 1, kind: input, shape index: {}]   ;;  %s2559_s2 = inlined_call_operand.vmem [shape: f32[1,96], index: 2, kind: input, shape index: {}]   ;;  %s2560_s3 = inlined_call_operand.vmem [shape: f32[128,8], index: 3, kind: input, shape index: {}]   ;;  %s2561_s4 = inlined_call_operand.vmem [shape: f32[128,8], index: 4, kind: input, shape index: {}]   ;;  %s2562_s5 = inlined_call_operand.vmem [shape: bf16[8,8], index: 5, kind: input, shape index: {}]   ;;  %s2563_s6 = inlined_call_operand.vmem [shape: f32[2,1,1,8], index: 6, kind: input, shape index: {}]   ;;  %s2564_s7 = inlined_call_operand.hbm [shape: f32[2,8,32], index: 7, kind: output, shape index: {0}]   ;;  %s2565_s8 = inlined_call_operand.hbm [shape: f32[2,4,8,8], index: 8, kind: output, shape index: {1}]  }
   0x1   :  { %2571 = sst [smem:[#allocation8_spill]] %s2557_s0 }
   0x2   :  { %14 = vsyncpa [#allocation3], 0 }
   0x3   :  { %16 = vsyncpa [#allocation3 + $0x1], 0 }
   0x4   :  { %17 = vsyncpa [#allocation5], 0 }
   0x5   :  { %19 = vsyncpa [#allocation5 + $0x1], 0  ;;  %s1910_s27 = smov 0   ;;  %s1912_s28 = smov 0  }
   0x6   :  { %s1914_s29 = smov 0   ;;  %s1916_s30 = smov 0  }
   0x7   :  { %s1918_s9 = smov 0   ;;  %s1920_s10 = smov 0  }
   0x8 LB: > { %s1550_s11 = sadd.s32 4294967295, %s1840_s10   ;;  %s1551_s12 = sadd.s32 4294967294, %s1840_s10   ;;  %s1840_s10 = sphi %s1920_s10, %s25_s10   ;;  %s1836_s9 = sphi %s1918_s9, %s2588_s9   ;;  %s1832_s30 = sphi %s1916_s30, %s2587_s30   ;;  %s1828_s29 = sphi %s1914_s29, %s2586_s29   ;;  %s1824_s28 = sphi %s1912_s28, %s2585_s28   ;;  %s1820_s27 = sphi %s1910_s27, %s2584_s27  }
   0x9   : > { %s37_s13 = sadd.s32 1, %s1836_s9  ;;  %s213_s14 = sadd.s32 1, %s1828_s29 }
   0xa   : > { %p39_p0 = scmp.ge.s32.totalorder %s37_s13, 2  ;;  %p223_p1 = scmp.ne.s32.totalorder %s1828_s29, %s1824_s28 }
   0xb   : > { %p224_p2 = scmp.eq.s32.totalorder %s1550_s11, 1  ;;  %p229_p3 = scmp.ne.s32.totalorder %s1824_s28, %s1820_s27 }
   0xc   : > { %s2590_s13 = smov (%p39_p0, %s37_s13), 0  ;;  %p230_p5 = scmp.eq.s32.totalorder %s1551_s12, 1 }
   0xd   : > { %p1950_p4 = por %p224_p2, %p223_p1  ;;  %s208_s16 = ssub.s32 %s1836_s9, %s2590_s13 }
   0xe   : > { %p1556_p6 = scmp.ge.s32.totalorder %s1840_s10, 1  ;;  %p211_p7 = scmp.eq.s32.totalorder %s208_s16, 0 }
   0xf   : > { %p1957_p8 = por %p230_p5, %p229_p3  ;;  %p311_p9 = scmp.lt.s32.totalorder %s1840_s10, 3 }
  0x10   : > { %s1963_s18 = scalar_select %p211_p7, %s1828_s29, %s213_s14  }
  0x11   : > { %p312_p10 = pnand %p1556_p6, %p311_p9 }
  0x12   : > { %v1712_v0 = vld [vmem:[%s2558_s1] sm:$0xff] (!%p312_p10)   ;;  %v1842_v1 = vmov (!%p312_p10), 0.0   ;;  %v1713_v2 = vld [vmem:[%s2558_s1 + $0x8] sm:$0xff] (!%p312_p10)   ;;  %vm1843_vm0 = vmmov (!%p312_p10), 0   ;;  %p359_p11 = scmp.lt.s32.totalorder (!%p312_p10), %s1832_s30, 1  ;;  %vm399_vm1 = vcmask (!%p312_p10), 261120   ;;  %v567_v52 = vlaneseq (!%p312_p10) }
  0x13   : > { %315 = sbr.rel (%p312_p10) target bundleno = 8079 (0x1f8f), region = 48  ;;  %1599 = vmatprep.subr.bf16.mxu0 (!%p312_p10), %v1842_v1  ;;  %1603 = vmatprep.mubr.msk.bf16.mxu0 (!%p312_p10), %vm1843_vm0, %v1842_v1  ;;  %s2574_s0 = sld [smem:[#allocation8_spill]] (!%p312_p10)  ;;  %v443_v4 = vld [vmem:[%s2560_s3] sm:$0xff] (!%p312_p10)  ;;  %v444_v5 = vld [vmem:[%s2560_s3 + $0x8] sm:$0xff] (!%p312_p10)  ;;  %vm491_vm2 = vcmask (!%p312_p10), 64512   ;;  %v1844_v6 = vmov (!%p312_p10), 0  }
  0x14   : > { %1600 = vmatpush3.bf16.msra.mxu0 (!%p312_p10), %v1712_v0  ;;  %522 = vmatprep.subr.bf16.mxu1 (!%p312_p10), %v1844_v6  ;;  %v482_v7 = vpack.c.bf16 (!%p312_p10), %v444_v5, %v443_v4  ;;  %v445_v8 = vld [vmem:[%s2560_s3 + $0x10] sm:$0xff] (!%p312_p10)  ;;  %v446_v9 = vld [vmem:[%s2560_s3 + $0x18] sm:$0xff] (!%p312_p10)  ;;  %v447_v13 = vld [vmem:[%s2560_s3 + $0x20] sm:$0xff] (!%p312_p10)  ;;  %s1845_s14 = smov (!%p312_p10), 96   ;;  %s1846_s16 = smov (!%p312_p10), 1   ;;  %v568_v53 = vshrl.u32 (!%p312_p10), %v567_v52, 7 }
  0x15   : > { %1601 = vmatprep.subr.bf16.mxu0 (!%p312_p10), %v1842_v1  ;;  %554 = vmatprep.mubr.bf16.mxu1 (!%p312_p10), %v1844_v6  ;;  %v483_v11 = vpack.c.bf16 (!%p312_p10), %v446_v9, %v445_v8  ;;  %v448_v14 = vld [vmem:[%s2560_s3 + $0x28] sm:$0xff] (!%p312_p10)  ;;  %v449_v17 = vld [vmem:[%s2560_s3 + $0x30] sm:$0xff] (!%p312_p10)  ;;  %v450_v18 = vld [vmem:[%s2560_s3 + $0x38] sm:$0xff] (!%p312_p10)  ;;  %s1847_s19 = smov (!%p312_p10), 2   ;;  %s2568_s20 = smov (!%p312_p10), 4   ;;  %vm624_vm6 = vcmask (!%p312_p10), 1043456  }
  0x16   : > { %v2001_v10 = vsel (!%p312_p10), %vm491_vm2, %v482_v7, 0  ;;  %v484_v15 = vpack.c.bf16 (!%p312_p10), %v448_v14, %v447_v13  ;;  %v485_v19 = vpack.c.bf16 (!%p312_p10), %v450_v18, %v449_v17  ;;  %v451_v21 = vld [vmem:[%s2560_s3 + $0x40] sm:$0xff] (!%p312_p10)  ;;  %v452_v22 = vld [vmem:[%s2560_s3 + $0x48] sm:$0xff] (!%p312_p10)  ;;  %v453_v25 = vld [vmem:[%s2560_s3 + $0x50] sm:$0xff] (!%p312_p10)  ;;  %v569_v54 = vand.u32 (!%p312_p10), 1, %v568_v53  ;;  %s2566_s21 = smov (!%p312_p10), 120  }
  0x17   : > { %523 = vmatpush1.bf16.xpose.msra.mxu1 (!%p312_p10), %v2001_v10  ;;  %v2006_v12 = vsel (!%p312_p10), %vm491_vm2, %v483_v11, 0  ;;  %v486_v23 = vpack.c.bf16 (!%p312_p10), %v452_v22, %v451_v21  ;;  %v454_v26 = vld [vmem:[%s2560_s3 + $0x58] sm:$0xff] (!%p312_p10)  ;;  %v455_v29 = vld [vmem:[%s2560_s3 + $0x60] sm:$0xff] (!%p312_p10)  ;;  %v456_v30 = vld [vmem:[%s2560_s3 + $0x68] sm:$0xff] (!%p312_p10)  ;;  %v578_v58 = vand.u32 (!%p312_p10), 2, %v568_v53  ;;  %v587_v62 = vand.u32 (!%p312_p10), 4, %v568_v53 }
  0x18   : > { %1602 = vmatpush3.bf16.msra.mxu0 (!%p312_p10), %v1713_v2  ;;  %524 = vmatprep.subr.bf16.mxu1 (!%p312_p10), %v1844_v6  ;;  %v2017_v16 = vsel (!%p312_p10), %vm491_vm2, %v484_v15, 0  ;;  %v2028_v20 = vsel (!%p312_p10), %vm491_vm2, %v485_v19, 0  ;;  %v487_v27 = vpack.c.bf16 (!%p312_p10), %v454_v26, %v453_v25  ;;  %v488_v31 = vpack.c.bf16 (!%p312_p10), %v456_v30, %v455_v29  ;;  %v457_v33 = vld [vmem:[%s2560_s3 + $0x70] sm:$0xff] (!%p312_p10)  ;;  %v458_v34 = vld [vmem:[%s2560_s3 + $0x78] sm:$0xff] (!%p312_p10)  ;;  %v1560_v37 = vld [vmem:[%s2559_s2] ss:$0 sm:$0xff] (!%p312_p10) }
  0x19   : > { %1607 = vmatprep.subr.bf16.mxu0 (!%p312_p10), %v1842_v1  ;;  %v2039_v24 = vsel (!%p312_p10), %vm491_vm2, %v486_v23, 0  ;;  %v489_v35 = vpack.c.bf16 (!%p312_p10), %v458_v34, %v457_v33  ;;  %vm2094_vm3 = vcmp.ne.s32.totalorder (!%p312_p10), %v569_v54, 0  ;;  %vm2101_vm4 = vcmp.ne.s32.totalorder (!%p312_p10), %v578_v58, 0  ;;  %v475_v17 = vld [vmem:[%s2562_s5] sm:$0xf] (!%p312_p10)  ;;  %v460_v26 = vld [vmem:[%s2561_s4 + $0x8] sm:$0xff] (!%p312_p10) }
  0x1a   : > { %s1977_s23 = scalar_select %p359_p11, %s1832_s30, 1  ;;  %v2050_v28 = vsel %vm491_vm2, %v487_v27, 0  ;;  %v2061_v32 = vsel %vm491_vm2, %v488_v31, 0  ;;  %vm2108_vm5 = vcmp.ne.s32.totalorder %v587_v62, 0  ;;  %v2128_v18 = vsel %vm624_vm6, %v475_v17, 0  ;;  %v459_v25 = vld [vmem:[%s2561_s4] sm:$0xff] }
  0x1b   : > { %v2072_v36 = vsel %vm491_vm2, %v489_v35, 0  ;;  %v461_v27 = vld [vmem:[%s2561_s4 + $0x10] sm:$0xff]  ;;  %v2153_v29 = vpack.c.bf16 %v460_v26, %v459_v25  ;;  %v462_v30 = vld [vmem:[%s2561_s4 + $0x18] sm:$0xff]  ;;  %v471_v53 = vld [vmem:[%s2561_s4 + $0x60] sm:$0xff]  ;;  %s1850_s22 = smov 64   ;;  %vm953_vm7 = vcmask 130112  }
  0x1c   : > { %s1559_s24 = sshll.u32 %s1977_s23, 2  ;;  %s372_s25 = scalar_lea.vmem %s2563_s6, %s1977_s23  ;;  %v2159_v33 = vpack.c.bf16 %v462_v30, %v461_v27  ;;  %v472_v54 = vld [vmem:[%s2561_s4 + $0x68] sm:$0xff]  ;;  %v474_v58 = vld [vmem:[%s2561_s4 + $0x78] sm:$0xff]  ;;  %vm1162_vm8 = vcmask 195712  }
  0x1d   : > { %s362_s11 = scalar_lea.vmem %s2574_s0, %s1559_s24  ;;  %v2119_v4 = vld [vmem:[%s372_s25] ss:$0 sm:$0xff]  ;;  %s1851_s24 = smov 88  }
  0x1e   : > { %v375_v3 = vld [vmem:[%s362_s11] sm:$0xf]  ;;  %s2135_s11 = sand.u32 1, %s1824_s28   ;;  %s2582_s25 = smov 120  }
  0x1f   : > { %1604 = vmatmul.mubr.msk.bf16.vlgmr.msra.gmra.mrb[0].mxu0 %vm399_vm1, %v375_v3  ;;  %525 = vmatpush1.bf16.xpose.msra.mxu1 %v2006_v12  ;;  %s1558_s12 = sshll.u32 %s2135_s11, 5  ;;  %s1852_s23 = smov 56  }
  0x20   : > { %1609 = vmatprep.mubr.msk.bf16.mxu0 %vm1843_vm0, %v1842_v1  ;;  %526 = vmatprep.subr.bf16.mxu1 %v1844_v6 }
  0x21   : > { %1608 = vmatpush3.bf16.msra.mxu0 %v2128_v18 }
  0x22   : > { %704 = vmatprep.subr.bf16.mxu0 %v1844_v6 }
  0x27   : > { %527 = vmatpush1.bf16.xpose.msra.mxu1 %v2017_v16 }
  0x28   : > { %528 = vmatprep.subr.bf16.mxu1 %v1844_v6 }
  0x2f   : > { %529 = vmatpush1.bf16.xpose.msra.mxu1 %v2028_v20 }
  0x30   : > { %530 = vmatprep.subr.bf16.mxu1 %v1844_v6 }
  0x37   : > { %531 = vmatpush1.bf16.xpose.msra.mxu1 %v2039_v24 }
  0x38   : > { %532 = vmatprep.subr.bf16.mxu1 %v1844_v6 }
  0x3f   : > { %533 = vmatpush1.bf16.xpose.msra.mxu1 %v2050_v28 }
  0x40   : > { %534 = vmatprep.subr.bf16.mxu1 %v1844_v6 }
  0x47   : > { %535 = vmatpush1.bf16.xpose.msra.mxu1 %v2061_v32 }
  0x48   : > { %536 = vmatprep.subr.bf16.mxu1 %v1844_v6 }
  0x4f   : > { %537 = vmatpush1.bf16.xpose.msra.mxu1 %v2072_v36 }
  0x50   : > { %538 = vmatprep.subr.bf16.mxu1 %v1844_v6 }
  0xf2   : > { %v437_v38 = vpop.f32.mrb[0].mxu0 }
  0xf3   : > { %v2079_v39 = vadd.f32 %v1560_v37, %v437_v38  ;;  %v1605_v40 = vpop.f32.mrb[1].mxu0  ;;  %v463_v37 = vld [vmem:[%s2561_s4 + $0x20] sm:$0xff]  ;;  %v464_v38 = vld [vmem:[%s2561_s4 + $0x28] sm:$0xff] }
  0xf4   : > { %v440_v41 = vpop.f32.mrb[2].mxu0 }
  0xf5   : > { %478 = vrot.lane.b32.xlu0 %v2079_v39, %s1845_s14  ;;  %v1606_v42 = vpop.f32.mrb[3].mxu0  ;;  %v2086_v46 = vpack.c.bf16 %v2079_v39, %v2079_v39  ;;  %s2138_s14 = scalar_lea.vmem [#allocation4], %s1558_s12  ;;  %s1853_s12 = smov 80  }
  0xf6   : > { %v2171_v42 = vpack.c.bf16 %v464_v38, %v463_v37 }
 0x167   : > { %v479_v43 = vpop.permute.xlu0 %478 }
 0x168   : > { %v490_v44 = vpack.c.bf16 %v479_v43, %v479_v43  ;;  %v465_v43 = vld [vmem:[%s2561_s4 + $0x30] sm:$0xff] }
 0x16a   : > { %v520_v45 = vsel %vm491_vm2, %v490_v44, 0  ;;  %v466_v44 = vld [vmem:[%s2561_s4 + $0x38] sm:$0xff] }
 0x16b   : > { %539 = vmatpush1.bf16.xpose.msra.mxu1 %v520_v45  ;;  %v2181_v45 = vpack.c.bf16 %v466_v44, %v465_v43 }
 0x16c   : > { %1613 = vmatprep.subr.bf16.mxu1 %v1842_v1 }
 0x172   : > { %1564 = vmatmul.mubr.msk.bf16.vlgmr.msra.gmra.mrb[0].mxu1 %vm491_vm2, %v2086_v46 }
 0x173   : > { %1615 = vmatprep.mubr.msk.bf16.mxu1 %vm1843_vm0, %v1842_v1  ;;  %1614 = vmatpush3.bf16.msra.mxu1 %v2128_v18 }
 0x174   : > { %909 = vmatprep.subr.bf16.mxu1 %v1844_v6 }
 0x245   : > { %v556_v47 = vpop.f32.mrb[0].mxu1 }
 0x246   : > { %564 = vrot.lane.b32.xlu0 %v556_v47, %s1846_s16  ;;  %v558_v48 = vpop.f32.mrb[1].mxu1  ;;  %v467_v47 = vld [vmem:[%s2561_s4 + $0x40] sm:$0xff] }
 0x247   : > { %v560_v49 = vpop.f32.mrb[2].mxu1 }
 0x248   : > { %v561_v50 = vpop.f32.mrb[3].mxu1 }
 0x249   : > { %v469_v50 = vld [vmem:[%s2561_s4 + $0x50] sm:$0xff] }
 0x2b8   : > { %v565_v51 = vpop.permute.xlu0 %564 }
 0x2b9   : > { %572 = vrot.lane.b32.xlu1 %v565_v51, %s1846_s16 }
 0x32b   : > { %v573_v56 = vpop.permute.xlu1 %572 }
 0x32c   : > { %v577_v57 = vsel %vm2094_vm3, %v573_v56, %v565_v51  ;;  %v470_v51 = vld [vmem:[%s2561_s4 + $0x58] sm:$0xff]  ;;  %v2211_v56 = vpack.c.bf16 %v472_v54, %v471_v53 }
 0x32d   : > { %581 = vrot.lane.b32.xlu1 %v577_v57, %s1847_s19  ;;  %v2201_v52 = vpack.c.bf16 %v470_v51, %v469_v50 }
 0x39f   : > { %v582_v60 = vpop.permute.xlu1 %581 }
 0x3a0   : > { %v586_v61 = vsel %vm2101_vm4, %v582_v60, %v577_v57  ;;  %v473_v57 = vld [vmem:[%s2561_s4 + $0x70] sm:$0xff] }
 0x3a1   : > { %590 = vrot.lane.b32.xlu0 %v586_v61, %s2568_s20  ;;  %v2222_v60 = vpack.c.bf16 %v474_v58, %v473_v57  ;;  %s1557_s20 = sshll.u32 %s2135_s11, 3 }
 0x3a2   : > { %s2266_s26 = scalar_lea.vmem [#allocation2], %s1557_s20  ;;  %s1856_s20 = smov 72  }
 0x413   : > { %v591_v0 = vpop.permute.xlu0 %590 }
 0x414   : > { %v595_v2 = vsel %vm2108_vm5, %v591_v0, %v586_v61 }
 0x415   : > { %597 = vrot.lane.b32.xlu1 %v595_v2, %s2566_s21  ;;  %s2581_s21 = smov 4  }
 0x487   : > { %v598_v3 = vpop.permute.xlu1 %597 }
 0x488   : > { %v600_v5 = vadd.f32 %v598_v3, %v558_v48  ;;  %v468_v48 = vld [vmem:[%s2561_s4 + $0x48] sm:$0xff] }
 0x489   : > { %v2191_v49 = vpack.c.bf16 %v468_v48, %v467_v47 }
 0x48a   : > { %v607_v7 = vadd.f32 %v2119_v4, %v600_v5 }
 0x48c   : > { %v608_v8 = vsel %vm491_vm2, %v607_v7, -inf }
 0x48d   : > { %609 = vmax.xlane.f32.xlu0 %v608_v8 }
 0x51a   : > { %v610_v9 = vpop.xlane.xlu0 %609 }
 0x51b   : > { %v611_v11 = vsub.f32 %v607_v7, %v610_v9 }
 0x51d   : > { %v612_v13 = vmul.f32 1.442695, %v611_v11 }
 0x51f   : > { %1714 = vpow2.f32 %v612_v13 }
 0x529   : > { %v1715_v14 = vpop.eup %1714 }
 0x52a   : > { %v614_v15 = vsel %vm491_vm2, %v1715_v14, 0.0 }
 0x52b   : > { %615 = vadd.xlane.f32.xlu1 %v614_v15 }
 0x5b8   : > { %v616_v19 = vpop.xlane.xlu1 %615 }
 0x5b9   : > { %1716 = vrcp.f32 %v616_v19 }
 0x5c3   : > { %v1717_v21 = vpop.eup %1716 }
 0x5c4   : > { %v618_v22 = vmul.f32 %v1717_v21, %v1715_v14 }
 0x5c6   : > { %v620_v23 = vpack.c.bf16 %v618_v22, %v618_v22  ;;  %619 = vst.msk [vmem:[%s2138_s14] sm:$0xff] %vm491_vm2, %v618_v22 }
 0x5c8   : > { %1610 = vmatmul.mubr.msk.bf16.vlgmr.msra.gmra.mrb[4].mxu0 %vm491_vm2, %v620_v23 }
 0x5c9   : > { %1567 = vmatprep.mubr.msk.bf16.mxu0 %vm491_vm2, %v620_v23  ;;  %705 = vmatpush1.bf16.msra.mxu0 %v2153_v29 }
 0x5ca   : > { %706 = vmatprep.subr.bf16.mxu0 %v1844_v6 }
 0x5cd   : > { %707 = vmatpush1.bf16.msra.mxu0 %v2159_v33 }
 0x5ce   : > { %708 = vmatprep.subr.bf16.mxu0 %v1844_v6 }
 0x5d1   : > { %709 = vmatpush1.bf16.msra.mxu0 %v2171_v42 }
 0x5d2   : > { %710 = vmatprep.subr.bf16.mxu0 %v1844_v6 }
 0x5d5   : > { %711 = vmatpush1.bf16.msra.mxu0 %v2181_v45 }
 0x5d6   : > { %712 = vmatprep.subr.bf16.mxu0 %v1844_v6 }
 0x5d9   : > { %713 = vmatpush1.bf16.msra.mxu0 %v2191_v49 }
 0x5da   : > { %714 = vmatprep.subr.bf16.mxu0 %v1844_v6 }
 0x5dd   : > { %715 = vmatpush1.bf16.msra.mxu0 %v2201_v52 }
 0x5de   : > { %716 = vmatprep.subr.bf16.mxu0 %v1844_v6 }
 0x5e1   : > { %717 = vmatpush1.bf16.msra.mxu0 %v2211_v56 }
 0x5e2   : > { %718 = vmatprep.subr.bf16.mxu0 %v1844_v6 }
 0x5e5   : > { %719 = vmatpush1.bf16.msra.mxu0 %v2222_v60 }
 0x5e6   : > { %720 = vmatprep.subr.bf16.mxu0 %v1844_v6 }
 0x69b   : > { %v662_v31 = vpop.f32.mrb[4].mxu0 }
 0x69c   : > { %v668_v34 = vsel %vm491_vm2, %v662_v31, 0.0  ;;  %v1611_v35 = vpop.f32.mrb[5].mxu0 }
 0x69d   : > { %670 = vrot.lane.b32.xlu0 %v668_v34, %s1846_s16  ;;  %v665_v40 = vpop.f32.mrb[6].mxu0 }
 0x69e   : > { %v1612_v41 = vpop.f32.mrb[7].mxu0 }
 0x70f   : > { %v671_v61 = vpop.permute.xlu0 %670 }
 0x710   : > { %674 = vrot.lane.b32.xlu1 %v671_v61, %s1846_s16 }
 0x714   : > { %689 = vrot.lane.b32.xlu1 %v2079_v39, %s1850_s22  ;;  %s1854_s22 = smov 112  }
 0x718   : > { %745 = vrot.lane.b32.xlu1 %v2079_v39, %s1851_s24  ;;  %s1855_s24 = smov 48  }
 0x782   : > { %v675_v62 = vpop.permute.xlu1 %674 }
 0x783   : > { %v677_v0 = vsel %vm2094_vm3, %v675_v62, %v671_v61 }
 0x784   : > { %679 = vrot.lane.b32.xlu0 %v677_v0, %s1847_s19 }
 0x786   : > { %v690_v2 = vpop.permute.xlu1 %689 }
 0x787   : > { %v700_v3 = vpack.c.bf16 %v690_v2, %v690_v2 }
 0x789   : > { %v702_v5 = vsel %vm624_vm6, %v700_v3, 0 }
 0x78a   : > { %721 = vmatpush1.bf16.msra.mxu0 %v702_v5  ;;  %v746_v14 = vpop.permute.xlu1 %745 }
 0x78b   : > { %758 = vmatprep.subr.bf16.mxu0 %v1844_v6  ;;  %v748_v15 = vpack.c.bf16 %v746_v14, %v746_v14 }
 0x78d   : > { %v756_v17 = vsel %vm491_vm2, %v748_v15, 0 }
 0x7f6   : > { %v680_v7 = vpop.permute.xlu0 %679 }
 0x7f7   : > { %v682_v8 = vsel %vm2101_vm4, %v680_v7, %v677_v0 }
 0x7f8   : > { %684 = vrot.lane.b32.xlu0 %v682_v8, %s2581_s21 }
 0x7fc   : > { %750 = vrot.lane.b32.xlu0 %v2086_v46, %s2582_s25 }
 0x86a   : > { %v685_v9 = vpop.permute.xlu0 %684 }
 0x86b   : > { %v687_v11 = vsel %vm2108_vm5, %v685_v9, %v682_v8 }
 0x86c   : > { %v688_v13 = vpack.c.bf16 %v687_v11, %v687_v11 }
 0x86e   : > { %737 = vmatmul.mubr.bf16.vlgmr.msra.gmra.mrb[8].mxu0 %v688_v13  ;;  %v751_v19 = vpop.permute.xlu0 %750 }
 0x86f   : > { %759 = vmatpush1.bf16.xpose.msra.mxu0 %v2001_v10  ;;  %790 = vmatprep.mubr.bf16.mxu0 %v1844_v6 }
 0x870   : > { %760 = vmatprep.subr.bf16.mxu0 %v1844_v6 }
 0x877   : > { %761 = vmatpush1.bf16.xpose.msra.mxu0 %v2006_v12 }
 0x878   : > { %762 = vmatprep.subr.bf16.mxu0 %v1844_v6 }
 0x87f   : > { %763 = vmatpush1.bf16.xpose.msra.mxu0 %v2017_v16 }
 0x880   : > { %764 = vmatprep.subr.bf16.mxu0 %v1844_v6 }
 0x887   : > { %765 = vmatpush1.bf16.xpose.msra.mxu0 %v2028_v20 }
 0x888   : > { %766 = vmatprep.subr.bf16.mxu0 %v1844_v6 }
 0x88f   : > { %767 = vmatpush1.bf16.xpose.msra.mxu0 %v2039_v24 }
 0x890   : > { %768 = vmatprep.subr.bf16.mxu0 %v1844_v6 }
 0x897   : > { %769 = vmatpush1.bf16.xpose.msra.mxu0 %v2050_v28 }
 0x898   : > { %770 = vmatprep.subr.bf16.mxu0 %v1844_v6 }
 0x89f   : > { %771 = vmatpush1.bf16.xpose.msra.mxu0 %v2061_v32 }
 0x8a0   : > { %772 = vmatprep.subr.bf16.mxu0 %v1844_v6 }
 0x8a7   : > { %773 = vmatpush1.bf16.xpose.msra.mxu0 %v2072_v36 }
 0x8a8   : > { %774 = vmatprep.subr.bf16.mxu0 %v1844_v6 }
 0x8af   : > { %775 = vmatpush1.bf16.xpose.msra.mxu0 %v756_v17 }
 0x8b0   : > { %1619 = vmatprep.subr.bf16.mxu0 %v1842_v1 }
 0x8b6   : > { %1568 = vmatmul.mubr.msk.bf16.vlgmr.msra.gmra.mrb[12].mxu0 %vm491_vm2, %v751_v19 }
 0x8b7   : > { %1620 = vmatpush3.bf16.msra.mxu0 %v2128_v18  ;;  %1621 = vmatprep.mubr.msk.bf16.mxu0 %vm1843_vm0, %v1842_v1 }
 0x8b8   : > { %1118 = vmatprep.subr.bf16.mxu0 %v1844_v6 }
 0x941   : > { %v738_v21 = vpop.f32.mrb[8].mxu0 }
 0x942   : > { %744 = vst.msk [vmem:[%s2266_s26] sm:$0xff] %vm491_vm2, %v738_v21  ;;  %v740_v22 = vpop.f32.mrb[9].mxu0 }
 0x943   : > { %v741_v23 = vpop.f32.mrb[10].mxu0 }
 0x944   : > { %v742_v25 = vpop.f32.mrb[11].mxu0 }
 0x989   : > { %v792_v26 = vpop.f32.mrb[12].mxu0 }
 0x98a   : > { %800 = vrot.lane.b32.xlu1 %v792_v26, %s1846_s16  ;;  %v794_v27 = vpop.f32.mrb[13].mxu0 }
 0x98b   : > { %v796_v30 = vpop.f32.mrb[14].mxu0 }
 0x98c   : > { %v797_v31 = vpop.f32.mrb[15].mxu0 }
 0x9fc   : > { %v801_v34 = vpop.permute.xlu1 %800 }
 0x9fd   : > { %804 = vrot.lane.b32.xlu0 %v801_v34, %s1846_s16 }
 0xa6f   : > { %v805_v35 = vpop.permute.xlu0 %804 }
 0xa70   : > { %v807_v37 = vsel %vm2094_vm3, %v805_v35, %v801_v34 }
 0xa71   : > { %809 = vrot.lane.b32.xlu1 %v807_v37, %s1847_s19 }
 0xae3   : > { %v810_v38 = vpop.permute.xlu1 %809 }
 0xae4   : > { %v812_v40 = vsel %vm2101_vm4, %v810_v38, %v807_v37 }
 0xae5   : > { %814 = vrot.lane.b32.xlu0 %v812_v40, %s2581_s21 }
 0xb57   : > { %v815_v41 = vpop.permute.xlu0 %814 }
 0xb58   : > { %v817_v43 = vsel %vm2108_vm5, %v815_v41, %v812_v40 }
 0xb59   : > { %819 = vrot.lane.b32.xlu1 %v817_v43, %s2582_s25 }
 0xbcb   : > { %v820_v44 = vpop.permute.xlu1 %819 }
 0xbcc   : > { %v822_v47 = vadd.f32 %v820_v44, %v794_v27 }
 0xbce   : > { %v823_v48 = vadd.f32 %v2119_v4, %v822_v47 }
 0xbd0   : > { %v824_v50 = vsel %vm491_vm2, %v823_v48, -inf }
 0xbd1   : > { %825 = vmax.xlane.f32.xlu0 %v824_v50 }
 0xc5e   : > { %v826_v51 = vpop.xlane.xlu0 %825 }
 0xc5f   : > { %v827_v53 = vsub.f32 %v823_v48, %v826_v51 }
 0xc61   : > { %v828_v54 = vmul.f32 1.442695, %v827_v53 }
 0xc63   : > { %1718 = vpow2.f32 %v828_v54 }
 0xc6d   : > { %v1719_v57 = vpop.eup %1718 }
 0xc6e   : > { %v830_v58 = vsel %vm491_vm2, %v1719_v57, 0.0 }
 0xc6f   : > { %831 = vadd.xlane.f32.xlu1 %v830_v58 }
 0xcfc   : > { %v832_v61 = vpop.xlane.xlu1 %831 }
 0xcfd   : > { %1720 = vrcp.f32 %v832_v61 }
 0xd07   : > { %v1721_v62 = vpop.eup %1720 }
 0xd08   : > { %v834_v0 = vmul.f32 %v1721_v62, %v1719_v57 }
 0xd0a   : > { %1569 = vst.msk [vmem:[%s2138_s14 + $0x8] sm:$0xff] %vm491_vm2, %v834_v0  ;;  %v837_v2 = vpack.c.bf16 %v834_v0, %v834_v0 }
 0xd0c   : > { %1616 = vmatmul.mubr.msk.bf16.vlgmr.msra.gmra.mrb[4].mxu1 %vm491_vm2, %v837_v2 }
 0xd0d   : > { %1571 = vmatprep.mubr.msk.bf16.mxu1 %vm491_vm2, %v837_v2  ;;  %910 = vmatpush1.bf16.msra.mxu1 %v2153_v29 }
 0xd0e   : > { %911 = vmatprep.subr.bf16.mxu1 %v1844_v6 }
 0xd11   : > { %912 = vmatpush1.bf16.msra.mxu1 %v2159_v33 }
 0xd12   : > { %913 = vmatprep.subr.bf16.mxu1 %v1844_v6 }
 0xd15   : > { %914 = vmatpush1.bf16.msra.mxu1 %v2171_v42 }
 0xd16   : > { %915 = vmatprep.subr.bf16.mxu1 %v1844_v6 }
 0xd19   : > { %916 = vmatpush1.bf16.msra.mxu1 %v2181_v45 }
 0xd1a   : > { %917 = vmatprep.subr.bf16.mxu1 %v1844_v6 }
 0xd1d   : > { %918 = vmatpush1.bf16.msra.mxu1 %v2191_v49 }
 0xd1e   : > { %919 = vmatprep.subr.bf16.mxu1 %v1844_v6 }
 0xd21   : > { %920 = vmatpush1.bf16.msra.mxu1 %v2201_v52 }
 0xd22   : > { %921 = vmatprep.subr.bf16.mxu1 %v1844_v6 }
 0xd25   : > { %922 = vmatpush1.bf16.msra.mxu1 %v2211_v56 }
 0xd26   : > { %923 = vmatprep.subr.bf16.mxu1 %v1844_v6 }
 0xd29   : > { %924 = vmatpush1.bf16.msra.mxu1 %v2222_v60 }
 0xd2a   : > { %925 = vmatprep.subr.bf16.mxu1 %v1844_v6 }
 0xddf   : > { %v875_v3 = vpop.f32.mrb[4].mxu1 }
 0xde0   : > { %v881_v5 = vsel %vm491_vm2, %v875_v3, 0.0  ;;  %v1617_v7 = vpop.f32.mrb[5].mxu1 }
 0xde1   : > { %883 = vrot.lane.b32.xlu0 %v881_v5, %s1846_s16  ;;  %v878_v8 = vpop.f32.mrb[6].mxu1 }
 0xde2   : > { %v1618_v9 = vpop.f32.mrb[7].mxu1 }
 0xe53   : > { %v884_v11 = vpop.permute.xlu0 %883 }
 0xe54   : > { %887 = vrot.lane.b32.xlu1 %v884_v11, %s1846_s16 }
 0xe58   : > { %902 = vrot.lane.b32.xlu1 %v2079_v39, %s1852_s23  ;;  %s1857_s23 = smov 104  }
 0xe5c   : > { %955 = vrot.lane.b32.xlu1 %v2079_v39, %s1853_s12  ;;  %s2570_s12 = smov 8  }
 0xec6   : > { %v888_v13 = vpop.permute.xlu1 %887 }
 0xec7   : > { %v890_v14 = vsel %vm2094_vm3, %v888_v13, %v884_v11 }
 0xec8   : > { %892 = vrot.lane.b32.xlu0 %v890_v14, %s1847_s19 }
 0xeca   : > { %v903_v15 = vpop.permute.xlu1 %902 }
 0xecb   : > { %v905_v17 = vpack.c.bf16 %v903_v15, %v903_v15 }
 0xecd   : > { %v907_v19 = vsel %vm624_vm6, %v905_v17, 0 }
 0xece   : > { %926 = vmatpush1.bf16.msra.mxu1 %v907_v19  ;;  %v956_v27 = vpop.permute.xlu1 %955 }
 0xecf   : > { %967 = vmatprep.subr.bf16.mxu1 %v1844_v6  ;;  %v958_v30 = vpack.c.bf16 %v956_v27, %v956_v27 }
 0xed1   : > { %v965_v31 = vsel %vm491_vm2, %v958_v30, 0 }
 0xf3a   : > { %v893_v21 = vpop.permute.xlu0 %892 }
 0xf3b   : > { %v895_v22 = vsel %vm2101_vm4, %v893_v21, %v890_v14 }
 0xf3c   : > { %897 = vrot.lane.b32.xlu0 %v895_v22, %s2581_s21 }
 0xf40   : > { %959 = vrot.lane.b32.xlu0 %v2086_v46, %s1854_s22 }
 0xfae   : > { %v898_v23 = vpop.permute.xlu0 %897 }
 0xfaf   : > { %v900_v25 = vsel %vm2108_vm5, %v898_v23, %v895_v22 }
 0xfb0   : > { %v901_v26 = vpack.c.bf16 %v900_v25, %v900_v25 }
 0xfb2   : > { %942 = vmatmul.mubr.bf16.vlgmr.msra.gmra.mrb[8].mxu1 %v901_v26  ;;  %v960_v34 = vpop.permute.xlu0 %959 }
 0xfb3   : > { %968 = vmatpush1.bf16.xpose.msra.mxu1 %v2001_v10  ;;  %999 = vmatprep.mubr.bf16.mxu1 %v1844_v6 }
 0xfb4   : > { %969 = vmatprep.subr.bf16.mxu1 %v1844_v6 }
 0xfbb   : > { %970 = vmatpush1.bf16.xpose.msra.mxu1 %v2006_v12 }
 0xfbc   : > { %971 = vmatprep.subr.bf16.mxu1 %v1844_v6 }
 0xfc3   : > { %972 = vmatpush1.bf16.xpose.msra.mxu1 %v2017_v16 }
 0xfc4   : > { %973 = vmatprep.subr.bf16.mxu1 %v1844_v6 }
 0xfcb   : > { %974 = vmatpush1.bf16.xpose.msra.mxu1 %v2028_v20 }
 0xfcc   : > { %975 = vmatprep.subr.bf16.mxu1 %v1844_v6 }
 0xfd3   : > { %976 = vmatpush1.bf16.xpose.msra.mxu1 %v2039_v24 }
 0xfd4   : > { %977 = vmatprep.subr.bf16.mxu1 %v1844_v6 }
 0xfdb   : > { %978 = vmatpush1.bf16.xpose.msra.mxu1 %v2050_v28 }
 0xfdc   : > { %979 = vmatprep.subr.bf16.mxu1 %v1844_v6 }
 0xfe3   : > { %980 = vmatpush1.bf16.xpose.msra.mxu1 %v2061_v32 }
 0xfe4   : > { %981 = vmatprep.subr.bf16.mxu1 %v1844_v6 }
 0xfeb   : > { %982 = vmatpush1.bf16.xpose.msra.mxu1 %v2072_v36 }
 0xfec   : > { %983 = vmatprep.subr.bf16.mxu1 %v1844_v6 }
 0xff3   : > { %984 = vmatpush1.bf16.xpose.msra.mxu1 %v965_v31 }
 0xff4   : > { %1625 = vmatprep.subr.bf16.mxu1 %v1842_v1 }
 0xffa   : > { %1572 = vmatmul.mubr.msk.bf16.vlgmr.msra.gmra.mrb[12].mxu1 %vm491_vm2, %v960_v34 }
 0xffb   : > { %1626 = vmatpush3.bf16.msra.mxu1 %v2128_v18  ;;  %1627 = vmatprep.mubr.msk.bf16.mxu1 %vm1843_vm0, %v1842_v1 }
 0xffc   : > { %1327 = vmatprep.subr.bf16.mxu1 %v1844_v6 }
0x1085   : > { %v2344_v35 = vpop.f32.mrb[8].mxu1 }
0x1086   : > { %v945_v37 = vpop.f32.mrb[9].mxu1 }
0x1087   : > { %v946_v38 = vpop.f32.mrb[10].mxu1 }
0x1088   : > { %v947_v40 = vpop.f32.mrb[11].mxu1 }
0x10cd   : > { %v1001_v41 = vpop.f32.mrb[12].mxu1 }
0x10ce   : > { %1009 = vrot.lane.b32.xlu1 %v1001_v41, %s1846_s16  ;;  %v1003_v43 = vpop.f32.mrb[13].mxu1 }
0x10cf   : > { %v1005_v44 = vpop.f32.mrb[14].mxu1 }
0x10d0   : > { %v1006_v47 = vpop.f32.mrb[15].mxu1 }
0x1140   : > { %v1010_v48 = vpop.permute.xlu1 %1009 }
0x1141   : > { %1013 = vrot.lane.b32.xlu0 %v1010_v48, %s1846_s16 }
0x11b3   : > { %v1014_v18 = vpop.permute.xlu0 %1013 }
0x11b4   : > { %v1016_v1 = vsel %vm2094_vm3, %v1014_v18, %v1010_v48 }
0x11b5   : > { %1018 = vrot.lane.b32.xlu1 %v1016_v1, %s1847_s19 }
0x1227   : > { %v1019_v50 = vpop.permute.xlu1 %1018 }
0x1228   : > { %v1021_v51 = vsel %vm2101_vm4, %v1019_v50, %v1016_v1 }
0x1229   : > { %1023 = vrot.lane.b32.xlu0 %v1021_v51, %s2581_s21 }
0x129b   : > { %v1024_v53 = vpop.permute.xlu0 %1023 }
0x129c   : > { %v1026_v54 = vsel %vm2108_vm5, %v1024_v53, %v1021_v51 }
0x129d   : > { %1028 = vrot.lane.b32.xlu1 %v1026_v54, %s2582_s25 }
0x130f   : > { %v1029_v57 = vpop.permute.xlu1 %1028 }
0x1310   : > { %v1031_v58 = vadd.f32 %v1029_v57, %v1003_v43 }
0x1312   : > { %v1032_v61 = vadd.f32 %v2119_v4, %v1031_v58 }
0x1314   : > { %v1033_v62 = vsel %vm491_vm2, %v1032_v61, -inf }
0x1315   : > { %1034 = vmax.xlane.f32.xlu0 %v1033_v62 }
0x13a2   : > { %v1035_v0 = vpop.xlane.xlu0 %1034 }
0x13a3   : > { %v1036_v2 = vsub.f32 %v1032_v61, %v1035_v0 }
0x13a5   : > { %v1037_v3 = vmul.f32 1.442695, %v1036_v2 }
0x13a7   : > { %1722 = vpow2.f32 %v1037_v3 }
0x13b1   : > { %v1723_v5 = vpop.eup %1722 }
0x13b2   : > { %v1039_v7 = vsel %vm491_vm2, %v1723_v5, 0.0 }
0x13b3   : > { %1040 = vadd.xlane.f32.xlu1 %v1039_v7 }
0x1440   : > { %v1041_v8 = vpop.xlane.xlu1 %1040 }
0x1441   : > { %1724 = vrcp.f32 %v1041_v8 }
0x144b   : > { %v1725_v9 = vpop.eup %1724 }
0x144c   : > { %v1043_v11 = vmul.f32 %v1725_v9, %v1723_v5 }
0x144e   : > { %1573 = vst.msk [vmem:[%s2138_s14 + $0x10] sm:$0xff] %vm491_vm2, %v1043_v11  ;;  %v1046_v13 = vpack.c.bf16 %v1043_v11, %v1043_v11 }
0x1450   : > { %1622 = vmatmul.mubr.msk.bf16.vlgmr.msra.gmra.mrb[16].mxu0 %vm491_vm2, %v1046_v13 }
0x1451   : > { %1575 = vmatprep.mubr.msk.bf16.mxu0 %vm491_vm2, %v1046_v13  ;;  %1119 = vmatpush1.bf16.msra.mxu0 %v2153_v29 }
0x1452   : > { %1120 = vmatprep.subr.bf16.mxu0 %v1844_v6 }
0x1455   : > { %1121 = vmatpush1.bf16.msra.mxu0 %v2159_v33 }
0x1456   : > { %1122 = vmatprep.subr.bf16.mxu0 %v1844_v6 }
0x1459   : > { %1123 = vmatpush1.bf16.msra.mxu0 %v2171_v42 }
0x145a   : > { %1124 = vmatprep.subr.bf16.mxu0 %v1844_v6 }
0x145d   : > { %1125 = vmatpush1.bf16.msra.mxu0 %v2181_v45 }
0x145e   : > { %1126 = vmatprep.subr.bf16.mxu0 %v1844_v6 }
0x1461   : > { %1127 = vmatpush1.bf16.msra.mxu0 %v2191_v49 }
0x1462   : > { %1128 = vmatprep.subr.bf16.mxu0 %v1844_v6 }
0x1465   : > { %1129 = vmatpush1.bf16.msra.mxu0 %v2201_v52 }
0x1466   : > { %1130 = vmatprep.subr.bf16.mxu0 %v1844_v6 }
0x1469   : > { %1131 = vmatpush1.bf16.msra.mxu0 %v2211_v56 }
0x146a   : > { %1132 = vmatprep.subr.bf16.mxu0 %v1844_v6 }
0x146d   : > { %1133 = vmatpush1.bf16.msra.mxu0 %v2222_v60 }
0x146e   : > { %1134 = vmatprep.subr.bf16.mxu0 %v1844_v6 }
0x1523   : > { %v1084_v14 = vpop.f32.mrb[16].mxu0 }
0x1524   : > { %v1090_v15 = vsel %vm491_vm2, %v1084_v14, 0.0  ;;  %v1623_v17 = vpop.f32.mrb[17].mxu0 }
0x1525   : > { %1092 = vrot.lane.b32.xlu0 %v1090_v15, %s1846_s16  ;;  %v1087_v19 = vpop.f32.mrb[18].mxu0 }
0x1526   : > { %v1624_v21 = vpop.f32.mrb[19].mxu0 }
0x1597   : > { %v1093_v22 = vpop.permute.xlu0 %1092 }
0x1598   : > { %1096 = vrot.lane.b32.xlu1 %v1093_v22, %s1846_s16 }
0x159c   : > { %1111 = vrot.lane.b32.xlu1 %v2079_v39, %s1855_s24 }
0x15a0   : > { %1164 = vrot.lane.b32.xlu1 %v2079_v39, %s1856_s20 }
0x160a   : > { %v1097_v23 = vpop.permute.xlu1 %1096 }
0x160b   : > { %v1099_v25 = vsel %vm2094_vm3, %v1097_v23, %v1093_v22 }
0x160c   : > { %1101 = vrot.lane.b32.xlu0 %v1099_v25, %s1847_s19 }
0x160e   : > { %v1112_v26 = vpop.permute.xlu1 %1111 }
0x160f   : > { %v1114_v27 = vpack.c.bf16 %v1112_v26, %v1112_v26 }
0x1611   : > { %v1116_v30 = vsel %vm624_vm6, %v1114_v27, 0 }
0x1612   : > { %1135 = vmatpush1.bf16.msra.mxu0 %v1116_v30 }
0x1613   : > { %1176 = vmatprep.subr.bf16.mxu0 %v1844_v6 }
0x167e   : > { %v1102_v31 = vpop.permute.xlu0 %1101 }
0x167f   : > { %v1104_v34 = vsel %vm2101_vm4, %v1102_v31, %v1099_v25 }
0x1680   : > { %1106 = vrot.lane.b32.xlu0 %v1104_v34, %s2581_s21 }
0x1684   : > { %1168 = vrot.lane.b32.xlu0 %v2086_v46, %s1857_s23  ;;  %s1379_s23 = scalar_lea.sflag [#allocation5], %s2135_s11 }
0x16f2   : > { %v1107_v37 = vpop.permute.xlu0 %1106 }
0x16f3   : > { %v1109_v38 = vsel %vm2108_vm5, %v1107_v37, %v1104_v34 }
0x16f4   : > { %v1110_v40 = vpack.c.bf16 %v1109_v38, %v1109_v38 }
0x16f6   : > { %1151 = vmatmul.mubr.bf16.vlgmr.msra.gmra.mrb[20].mxu0 %v1110_v40 }
0x16f7   : > { %1177 = vmatpush1.bf16.xpose.msra.mxu0 %v2001_v10  ;;  %1208 = vmatprep.mubr.bf16.mxu0 %v1844_v6  ;;  %v1165_v10 = vpop.permute.xlu1 %1164 }
0x16f8   : > { %1178 = vmatprep.subr.bf16.mxu0 %v1844_v6 }
0x16ff   : > { %1179 = vmatpush1.bf16.xpose.msra.mxu0 %v2006_v12  ;;  %v1167_v12 = vpack.c.bf16 %v1165_v10, %v1165_v10 }
0x1700   : > { %1180 = vmatprep.subr.bf16.mxu0 %v1844_v6 }
0x1707   : > { %1181 = vmatpush1.bf16.xpose.msra.mxu0 %v2017_v16  ;;  %v1174_v16 = vsel %vm491_vm2, %v1167_v12, 0 }
0x1708   : > { %1182 = vmatprep.subr.bf16.mxu0 %v1844_v6 }
0x170f   : > { %1183 = vmatpush1.bf16.xpose.msra.mxu0 %v2028_v20  ;;  %v1169_v20 = vpop.permute.xlu0 %1168 }
0x1710   : > { %1184 = vmatprep.subr.bf16.mxu0 %v1844_v6 }
0x1717   : > { %1185 = vmatpush1.bf16.xpose.msra.mxu0 %v2039_v24 }
0x1718   : > { %1186 = vmatprep.subr.bf16.mxu0 %v1844_v6 }
0x171f   : > { %1187 = vmatpush1.bf16.xpose.msra.mxu0 %v2050_v28 }
0x1720   : > { %1188 = vmatprep.subr.bf16.mxu0 %v1844_v6 }
0x1727   : > { %1189 = vmatpush1.bf16.xpose.msra.mxu0 %v2061_v32 }
0x1728   : > { %1190 = vmatprep.subr.bf16.mxu0 %v1844_v6 }
0x172f   : > { %1191 = vmatpush1.bf16.xpose.msra.mxu0 %v2072_v36 }
0x1730   : > { %1192 = vmatprep.subr.bf16.mxu0 %v1844_v6 }
0x1737   : > { %1193 = vmatpush1.bf16.xpose.msra.mxu0 %v1174_v16 }
0x173e   : > { %1576 = vmatmul.mubr.msk.bf16.vlgmr.msra.gmra.mrb[24].mxu0 %vm491_vm2, %v1169_v20 }
0x17c9   : > { %v2415_v24 = vpop.f32.mrb[20].mxu0 }
0x17ca   : > { %v1154_v28 = vpop.f32.mrb[21].mxu0 }
0x17cb   : > { %v1155_v46 = vpop.f32.mrb[22].mxu0 }
0x17cc   : > { %v1156_v41 = vpop.f32.mrb[23].mxu0 }
0x1811   : > { %v1210_v32 = vpop.f32.mrb[24].mxu0 }
0x1812   : > { %1218 = vrot.lane.b32.xlu1 %v1210_v32, %s1846_s16  ;;  %v1212_v43 = vpop.f32.mrb[25].mxu0 }
0x1813   : > { %v1214_v44 = vpop.f32.mrb[26].mxu0 }
0x1814   : > { %v1215_v36 = vpop.f32.mrb[27].mxu0 }
0x1884   : > { %v1219_v47 = vpop.permute.xlu1 %1218 }
0x1885   : > { %1222 = vrot.lane.b32.xlu0 %v1219_v47, %s1846_s16 }
0x18f7   : > { %v1223_v48 = vpop.permute.xlu0 %1222 }
0x18f8   : > { %v1225_v18 = vsel %vm2094_vm3, %v1223_v48, %v1219_v47 }
0x18f9   : > { %1227 = vrot.lane.b32.xlu1 %v1225_v18, %s1847_s19 }
0x196b   : > { %v1228_v1 = vpop.permute.xlu1 %1227 }
0x196c   : > { %v1230_v50 = vsel %vm2101_vm4, %v1228_v1, %v1225_v18 }
0x196d   : > { %1232 = vrot.lane.b32.xlu0 %v1230_v50, %s2581_s21 }
0x19df   : > { %v1233_v51 = vpop.permute.xlu0 %1232 }
0x19e0   : > { %v1235_v53 = vsel %vm2108_vm5, %v1233_v51, %v1230_v50 }
0x19e1   : > { %1237 = vrot.lane.b32.xlu1 %v1235_v53, %s2582_s25  ;;  %s1858_s25 = smov 40  }
0x1a53   : > { %v1238_v54 = vpop.permute.xlu1 %1237 }
0x1a54   : > { %v1240_v57 = vadd.f32 %v1238_v54, %v1212_v43 }
0x1a56   : > { %v1241_v58 = vadd.f32 %v2119_v4, %v1240_v57 }
0x1a58   : > { %v1242_v61 = vsel %vm491_vm2, %v1241_v58, -inf }
0x1a59   : > { %1243 = vmax.xlane.f32.xlu0 %v1242_v61 }
0x1ae6   : > { %v1244_v62 = vpop.xlane.xlu0 %1243 }
0x1ae7   : > { %v1245_v0 = vsub.f32 %v1241_v58, %v1244_v62 }
0x1ae9   : > { %v1246_v2 = vmul.f32 1.442695, %v1245_v0 }
0x1aeb   : > { %1726 = vpow2.f32 %v1246_v2 }
0x1af5   : > { %v1727_v3 = vpop.eup %1726 }
0x1af6   : > { %v1248_v5 = vsel %vm491_vm2, %v1727_v3, 0.0 }
0x1af7   : > { %1249 = vadd.xlane.f32.xlu1 %v1248_v5 }
0x1b84   : > { %v1250_v7 = vpop.xlane.xlu1 %1249 }
0x1b85   : > { %1728 = vrcp.f32 %v1250_v7 }
0x1b8f   : > { %v1729_v8 = vpop.eup %1728 }
0x1b90   : > { %v1252_v9 = vmul.f32 %v1729_v8, %v1727_v3 }
0x1b92   : > { %1577 = vst.msk [vmem:[%s2138_s14 + $0x18] sm:$0xff] %vm491_vm2, %v1252_v9  ;;  %v1255_v11 = vpack.c.bf16 %v1252_v9, %v1252_v9 }
0x1b94   : > { %1628 = vmatmul.mubr.msk.bf16.vlgmr.msra.gmra.mrb[16].mxu1 %vm491_vm2, %v1255_v11 }
0x1b95   : > { %1579 = vmatprep.mubr.msk.bf16.mxu1 %vm491_vm2, %v1255_v11  ;;  %1328 = vmatpush1.bf16.msra.mxu1 %v2153_v29 }
0x1b96   : > { %1329 = vmatprep.subr.bf16.mxu1 %v1844_v6 }
0x1b99   : > { %1330 = vmatpush1.bf16.msra.mxu1 %v2159_v33 }
0x1b9a   : > { %1331 = vmatprep.subr.bf16.mxu1 %v1844_v6 }
0x1b9d   : > { %1332 = vmatpush1.bf16.msra.mxu1 %v2171_v42 }
0x1b9e   : > { %1333 = vmatprep.subr.bf16.mxu1 %v1844_v6 }
0x1ba1   : > { %1334 = vmatpush1.bf16.msra.mxu1 %v2181_v45 }
0x1ba2   : > { %1335 = vmatprep.subr.bf16.mxu1 %v1844_v6 }
0x1ba5   : > { %1336 = vmatpush1.bf16.msra.mxu1 %v2191_v49 }
0x1ba6   : > { %1337 = vmatprep.subr.bf16.mxu1 %v1844_v6 }
0x1ba9   : > { %1338 = vmatpush1.bf16.msra.mxu1 %v2201_v52 }
0x1baa   : > { %1339 = vmatprep.subr.bf16.mxu1 %v1844_v6 }
0x1bad   : > { %1340 = vmatpush1.bf16.msra.mxu1 %v2211_v56 }
0x1bae   : > { %1341 = vmatprep.subr.bf16.mxu1 %v1844_v6 }
0x1bb1   : > { %1342 = vmatpush1.bf16.msra.mxu1 %v2222_v60 }
0x1bb2   : > { %1343 = vmatprep.subr.bf16.mxu1 %v1844_v6 }
0x1c67   : > { %v1293_v4 = vpop.f32.mrb[16].mxu1 }
0x1c68   : > { %v1299_v29 = vsel %vm491_vm2, %v1293_v4, 0.0  ;;  %v1629_v33 = vpop.f32.mrb[17].mxu1 }
0x1c69   : > { %1301 = vrot.lane.b32.xlu0 %v1299_v29, %s1846_s16  ;;  %v1296_v42 = vpop.f32.mrb[18].mxu1 }
0x1c6a   : > { %v1630_v45 = vpop.f32.mrb[19].mxu1 }
0x1cdb   : > { %v1302_v49 = vpop.permute.xlu0 %1301 }
0x1cdc   : > { %1305 = vrot.lane.b32.xlu1 %v1302_v49, %s1846_s16  ;;  %s1860_s16 = smov 16  }
0x1ce0   : > { %1320 = vrot.lane.b32.xlu1 %v2079_v39, %s1858_s25 }
0x1ce4   : > { %950 = vrot.lane.b32.xlu1 %v2344_v35, %s2570_s12 }
0x1d4e   : > { %v1306_v6 = vpop.permute.xlu1 %1305 }
0x1d4f   : > { %v1308_v52 = vsel %vm2094_vm3, %v1306_v6, %v1302_v49 }
0x1d50   : > { %1310 = vrot.lane.b32.xlu0 %v1308_v52, %s1847_s19  ;;  %s1587_s19 = sshll.u32 %s1832_s30, 9 }
0x1d51   : > { %s2473_s20 = scalar_lea.hbm %s2565_s8, %s1587_s19 }
0x1d52   : > { %v1321_v56 = vpop.permute.xlu1 %1320 }
0x1d53   : > { %v1323_v60 = vpack.c.bf16 %v1321_v56, %v1321_v56 }
0x1d55   : > { %v1325_v13 = vsel %vm624_vm6, %v1323_v60, 0 }
0x1d56   : > { %1344 = vmatpush1.bf16.msra.mxu1 %v1325_v13  ;;  %v951_v14 = vpop.permute.xlu1 %950 }
0x1d57   : > { %954 = vst.msk [vmem:[%s2266_s26] sm:$0xff] %vm953_vm7, %v951_v14 }
0x1dc2   : > { %v1311_v39 = vpop.permute.xlu0 %1310 }
0x1dc3   : > { %v1313_v35 = vsel %vm2101_vm4, %v1311_v39, %v1308_v52 }
0x1dc4   : > { %1315 = vrot.lane.b32.xlu0 %v1313_v35, %s2581_s21  ;;  %s1408_s21 = sshll.u32 %s2138_s14, 4  ;;  %s2476_s21 = int_to_ptr.vmem [resolvable:$true] %s1408_s21 }
0x1dc5   : > { %s1730_s25 = scalar_lea.vmem %s2476_s21, 512 }
0x1dc6   : > { %p1731_p12 = scmp.ne.s32.totalorder %s2476_s21, %s1730_s25 }
0x1dc8   : > { %1159 = vrot.lane.b32.xlu0 %v2415_v24, %s1860_s16  ;;  %p1732_p13 = pnand %p1731_p12, %p1950_p4  ;;  %s1861_s16 = smov [#allocation4]  }
0x1dc9   : > { %s1734_s12 = sshll.u32 %s1861_s16, 4  ;;  %s1735_s12 = int_to_ptr.vmem [resolvable:$false] %s1734_s12 }
0x1dca   : > { %p1733_p0 = pneg %p1732_p13  ;;  %s1736_s0 = scalar_lea.vmem %s1735_s12, 1024 }
0x1dcb   : > { %p1737_p1 = scmp.lt.s32.totalorder %s2476_s21, %s1735_s12  ;;  %p1738_p2 = scmp.lt.s32.totalorder %s1736_s0, %s1730_s25 }
0x1dcd   : > { %p1739_p3 = por %p1738_p2, %p1737_p1 }
0x1dcf   : > { %p1740_p5 = pnand %p1739_p3, %p1733_p0 }
0x1e36   : > { %v1316_v55 = vpop.permute.xlu0 %1315 }
0x1e37   : > { %v1318_v15 = vsel %vm2108_vm5, %v1316_v55, %v1313_v35 }
0x1e38   : > { %v1319_v17 = vpack.c.bf16 %v1318_v15, %v1318_v15 }
0x1e3a   : > { %v1160_v19 = vpop.permute.xlu0 %1159  ;;  %1360 = vmatmul.mubr.bf16.vlgmr.msra.gmra.mrb[20].mxu1 %v1319_v17 }
0x1e3b   : > { %1163 = vst.msk [vmem:[%s2266_s26] sm:$0xff] %vm1162_vm8, %v1160_v19 }
0x1e3c   : > { %1743 = shalt.err (!%p1740_p5)
}
0x1e3d   : > { %s1744_s14 = scalar_lea.hbm %s2473_s20, 512  ;;  %s1748_s24 = scalar_lea.hbm %s2565_s8, 1024 }
0x1e3e   : > { %p1745_p6 = scmp.ne.s32.totalorder %s2473_s20, %s1744_s14  ;;  %p1749_p10 = scmp.lt.u32.totalorder %s2473_s20, %s2565_s8 }
0x1e3f   : > { %p1750_p11 = scmp.lt.u32.totalorder %s1748_s24, %s1744_s14  ;;  %p1752_p13 = scmp.lt.u32.totalorder %s1744_s14, %s2473_s20 }
0x1e40   : > { %p1746_p7 = pnand %p1745_p6, %p1950_p4 }
0x1e41   : > { %p1751_p12 = por %p1750_p11, %p1749_p10 }
0x1e42   : > { %p1747_p9 = pneg %p1746_p7 }
0x1e43   : > { %p1753_p0 = por %p1752_p13, %p1751_p12 }
0x1e45   : > { %p1754_p1 = pnand %p1753_p0, %p1747_p9 }
0x1e47   : > { %1757 = shalt.err (!%p1754_p1)
}
0x1e48   : > { %s1862_s0 = smov 128   ;;  %s2583_s25 = smov 8   ;;  %vm1371_vm9 = vcmask 261312  }
0x1e49   : > { %1632 = dma.vmem_to_hbm [thread:$0]  (%p1950_p4), %s2476_s21, 512, %s2473_s20, %s1379_s23, %s1862_s0, %s1862_s0, %s2583_s25  }
0x1e4a   : > { %s1863_s19 = smov 24   ;;  %s1582_s14 = sshll.u32 %s1832_s30, 7 }
0x1e4b   : > { %s1393_s22 = sshll.u32 %s2266_s26, 4  ;;  %s2508_s12 = scalar_lea.hbm %s2564_s7, %s1582_s14  ;;  %s2510_s22 = int_to_ptr.vmem [resolvable:$true] %s1393_s22 }
0x1e4c   : > { %s1374_s20 = scalar_lea.sflag [#allocation3], %s2135_s11  ;;  %s1758_s21 = scalar_lea.vmem %s2510_s22, 128 }
0x1e4d   : > { %p1759_p2 = scmp.ne.s32.totalorder %s2510_s22, %s1758_s21  ;;  %s1864_s30 = smov [#allocation2]  }
0x1e4e   : > { %s1762_s23 = sshll.u32 %s1864_s30, 4  ;;  %s1763_s23 = int_to_ptr.vmem [resolvable:$false] %s1762_s23 }
0x1e4f   : > { %p1760_p3 = pnand %p1759_p2, %p1950_p4  ;;  %s1764_s0 = scalar_lea.vmem %s1763_s23, 256 }
0x1e50   : > { %p1765_p6 = scmp.lt.s32.totalorder %s2510_s22, %s1763_s23  ;;  %p1766_p7 = scmp.lt.s32.totalorder %s1764_s0, %s1758_s21 }
0x1e51   : > { %p1761_p5 = pneg %p1760_p3 }
0x1e52   : > { %p1767_p9 = por %p1766_p7, %p1765_p6 }
0x1e54   : > { %p1768_p10 = pnand %p1767_p9, %p1761_p5 }
0x1f0d   : > { %v1361_v59 = vpop.f32.mrb[20].mxu1 }
0x1f0e   : > { %1368 = vrot.lane.b32.xlu1 %v1361_v59, %s1863_s19  ;;  %v1363_v63 = vpop.f32.mrb[21].mxu1 }
0x1f0f   : > { %v1364_v21 = vpop.f32.mrb[22].mxu1 }
0x1f10   : > { %v1365_v22 = vpop.f32.mrb[23].mxu1 }
0x1f80   : > { %v1369_v23 = vpop.permute.xlu1 %1368 }
0x1f81   : > { %1372 = vst.msk [vmem:[%s2266_s26] sm:$0xff] %vm1371_vm9, %v1369_v23 }
0x1f82   : > { %1771 = shalt.err (!%p1768_p10)
}
0x1f83   : > { %s1772_s11 = scalar_lea.hbm %s2508_s12, 128  ;;  %s1776_s19 = scalar_lea.hbm %s2564_s7, 256 }
0x1f84   : > { %p1773_p11 = scmp.ne.s32.totalorder %s2508_s12, %s1772_s11  ;;  %p1777_p0 = scmp.lt.u32.totalorder %s2508_s12, %s2564_s7 }
0x1f85   : > { %p1778_p1 = scmp.lt.u32.totalorder %s1776_s19, %s1772_s11  ;;  %p1780_p3 = scmp.lt.u32.totalorder %s1772_s11, %s2508_s12 }
0x1f86   : > { %p1774_p12 = pnand %p1773_p11, %p1950_p4 }
0x1f87   : > { %p1779_p2 = por %p1778_p1, %p1777_p0 }
0x1f88   : > { %p1775_p13 = pneg %p1774_p12 }
0x1f89   : > { %p1781_p5 = por %p1780_p3, %p1779_p2 }
0x1f8b   : > { %p1782_p6 = pnand %p1781_p5, %p1775_p13 }
0x1f8d   : > { %1785 = shalt.err (!%p1782_p6)
}
0x1f8e   : > { %1631 = dma.vmem_to_hbm [thread:$0]  (%p1950_p4), %s2510_s22, 128, %s2508_s12, %s1374_s20  }
0x1f8f PF: > { %p1642_p7 = scmp.ge.s32.totalorder %s1840_s10, 2  ;;  %s1423_s16 = sand.u32 1, %s1820_s27  }
0x1f90   : > { %s1424_s21 = scalar_lea.sflag [#allocation3], %s1423_s16 }
0x1f91   : > { %p1636_p9 = pnand %p1642_p7, %p1957_p8 }
0x1f93   : > { %1811 = dma.done.wait (!%p1636_p9), %s1424_s21, 128  }
0x1f94   : > { %1813 = vsyncadd (!%p1636_p9), %s1424_s21, 4294967168  ;;  %s1433_s30 = scalar_lea.sflag [#allocation5], %s1423_s16 }
0x1f95   : > { %1815 = dma.done.wait (!%p1636_p9), %s1433_s30, 512  }
0x1f96   : > { %1817 = vsyncadd (!%p1636_p9), %s1433_s30, 4294966784  ;;  %s25_s10 = sadd.s32 1, %s1840_s10   ;;  %s2584_s27 = smov %s1824_s28 }
0x1f97   : > { %p22_p10 = scmp.ge.s32.totalorder %s25_s10, 4   ;;  %s2585_s28 = smov %s1828_s29 }
0x1f98   : > { %s2586_s29 = smov %s1963_s18  ;;  %s2587_s30 = smov %s1836_s9 }
0x1f99   : > { %s2588_s9 = smov %s2590_s13  ;;  %24 = sbr.rel (!%p22_p10) target bundleno = 8 (0x8), region = 112 }
0x1fa0   :  { %1438 = vsyncpa [#allocation3], 1 }
0x1fa1   :  { %1440 = vsyncpa [#allocation3 + $0x1], 1 }
0x1fa2   :  { %1441 = vsyncpa [#allocation5], 1 }
0x1fa3   :  { %1443 = vsyncpa [#allocation5 + $0x1], 1 }

</bundles_post_ra>
